<compile_context>
chip_gen: v6e
topology: v6e:2x2x1
jax: 0.10.0
libtpu: 0.0.40
codegen_flags: <defaults>
</compile_context>

<pallas_src>
import jax
import jax.numpy as jnp
from jax.experimental import pallas as pl
from jax.experimental.pallas import tpu as pltpu


def mlp_kernel(x_ref, w1_ref, b1_ref, w2_ref, b2_ref, w3_ref, b3_ref, o_ref):
    """Fused 3-layer MLP for one batch tile; writes a (tile_b, 1) block."""
    # Layer 1: cast the f32 x tile to bf16 on the VPU, MXU matmul with f32
    # accumulation, bias + ReLU on the VPU in f32.
    x = x_ref[...].astype(w1_ref.dtype)
    h1 = jnp.dot(x, w1_ref[...], preferred_element_type=jnp.float32)
    h1 = jnp.maximum(h1 + b1_ref[...], 0.0)
    # TODO(synk): nn.Dropout is identity in eval mode; training-mode stochastic
    # masking (pltpu.prng_random_bits + 1/(1-p) scaling) intentionally omitted.

    # Layer 2: same pattern.
    h2 = jnp.dot(h1.astype(w2_ref.dtype), w2_ref[...],
                 preferred_element_type=jnp.float32)
    h2 = jnp.maximum(h2 + b2_ref[...], 0.0)

    # Layer 3 (L1 -> 1): single MXU matvec contracting L1 -- no transpose and
    # no cross-sublane reduce (the previous XLU relayout rivaled the x DMA).
    out = jnp.dot(h2, w3_ref[...], preferred_element_type=jnp.float32)
    o_ref[...] = (out + b3_ref[0]).astype(o_ref.dtype)


def mlp_regression_forward(x, params, *, tile_b=1024, compute_dtype=jnp.bfloat16):
    """Runs the fused MLP kernel. x: (B, F_in) float32 -> (B,) float32.

    tile_b should be a multiple of 128; use 1024-2048 for production batches.
    On v7x keep the grid >= 2 steps so both TensorCores get work.  On v5e, cap
    tile_b at ~2048 (double-buffered f32 x tiles) or raise vmem_limit_bytes.
    """
    w1, b1, w2, b2, w3, b3 = params
    B, F_in = x.shape
    L0 = w1.shape[1]
    L1 = w2.shape[1]

    # Clamp oversized tiles for small batches; keep a multiple of 128 rows.
    tile_b = max(128, min(tile_b, pl.cdiv(B, 128) * 128))
    assert tile_b % 128 == 0, "tile_b must be a multiple of 128"
    num_tiles = pl.cdiv(B, tile_b)  # ragged tail handled by the partial block

    # Grid-invariant operands: cast once in the wrapper (negligible traffic);
    # biases and the final projection stay in f32.
    w1_c = w1.astype(compute_dtype)
    w2_c = w2.astype(compute_dtype)
    b1_r = b1.reshape(1, L0).astype(jnp.float32)
    b2_r = b2.reshape(1, L1).astype(jnp.float32)
    w3_c = w3.reshape(L1, 1).astype(jnp.float32)
    b3_s = b3.reshape(1).astype(jnp.float32)          # scalar -> SMEM

    const = dict(pipeline_mode=pl.Buffered(1))        # fetched once -> 1 buffer

    flops = 2 * B * (F_in * L0 + L0 * L1 + L1)
    bytes_accessed = (B * F_in * x.dtype.itemsize     # x stream (f32)
                      + (F_in * L0 + L0 * L1) * 2     # bf16 weights
                      + (L0 + L1 + L1 + 1) * 4        # biases + w3
                      + B * 4)                        # output

    out = pl.pallas_call(
        mlp_kernel,
        out_shape=jax.ShapeDtypeStruct((B, 1), jnp.float32),
        grid=(num_tiles,),
        in_specs=[
            pl.BlockSpec((tile_b, F_in), lambda i: (i, 0)),        # x tile (f32)
            pl.BlockSpec((F_in, L0), lambda i: (0, 0), **const),   # W1 (bf16)
            pl.BlockSpec((1, L0), lambda i: (0, 0), **const),      # b1 (f32)
            pl.BlockSpec((L0, L1), lambda i: (0, 0), **const),     # W2 (bf16)
            pl.BlockSpec((1, L1), lambda i: (0, 0), **const),      # b2 (f32)
            pl.BlockSpec((L1, 1), lambda i: (0, 0), **const),      # W3 (f32)
            pl.BlockSpec(memory_space=pltpu.MemorySpace.SMEM),     # b3 scalar
        ],
        out_specs=pl.BlockSpec((tile_b, 1), lambda i: (i, 0)),
        compiler_params=pltpu.CompilerParams(
            dimension_semantics=("parallel",),
        ),
        cost_estimate=pl.CostEstimate(
            flops=flops, transcendentals=0, bytes_accessed=bytes_accessed),
    )(x, w1_c, b1_r, w2_c, b2_r, w3_c, b3_s)

    # (B, 1) -> (B,), matching the module's .squeeze(1).
    return out[:, 0]


def init_params(key, input_size, layer_sizes, output_size=1):
    """Deterministic PyTorch-Linear-style init: U(-1/sqrt(fan_in), 1/sqrt(fan_in))."""
    sizes = [input_size] + list(layer_sizes) + [output_size]
    params = []
    for fan_in, fan_out in zip(sizes[:-1], sizes[1:]):
        key, kw, kb = jax.random.split(key, 3)
        bound = 1.0 / jnp.sqrt(float(fan_in))
        w = jax.random.uniform(kw, (fan_in, fan_out), jnp.float32, -bound, bound)
        b = jax.random.uniform(kb, (fan_out,), jnp.float32, -bound, bound)
        params.extend([w, b])
    return tuple(params)


def reference_forward_f32(x, params):
    """True float32 reference (what the PyTorch module computes in f32)."""
    w1, b1, w2, b2, w3, b3 = params
    h1 = jnp.maximum(x @ w1 + b1, 0.0)
    h2 = jnp.maximum(h1 @ w2 + b2, 0.0)
    return (h2 @ w3 + b3)[:, 0]


def reference_forward_matched(x, params, compute_dtype=jnp.bfloat16):
    """Pure-JAX reference mirroring the kernel's dtype policy."""
    w1, b1, w2, b2, w3, b3 = params
    h1 = jnp.dot(x.astype(compute_dtype), w1.astype(compute_dtype),
                 preferred_element_type=jnp.float32)
    h1 = jnp.maximum(h1 + b1, 0.0)
    h2 = jnp.dot(h1.astype(compute_dtype), w2.astype(compute_dtype),
                 preferred_element_type=jnp.float32)
    h2 = jnp.maximum(h2 + b2, 0.0)
    return (jnp.dot(h2, w3, preferred_element_type=jnp.float32) + b3)[:, 0]


if __name__ == "__main__":
    key = jax.random.PRNGKey(0)

    # MLPRegression(input_size=512, layer_sizes=[128, 64], output_size=1)
    input_size = 512
    layer_sizes = [128, 64]
    batch = 300   # NOT a multiple of the tile -> exercises the partial last block

    key, kx = jax.random.split(key)
    x = jax.random.normal(kx, (batch, input_size), jnp.float32)
    params = init_params(key, input_size, layer_sizes, output_size=1)

    # Toy shapes: tile_b=256 gives a 2-step grid (both TCs on v7x) with a ragged
    # trailing block.  Production batches should use the default tile_b=1024+.
    out = mlp_regression_forward(x, params, tile_b=256)
    out = jax.block_until_ready(out)
    assert out.shape == (batch,)

    # Validate against a true f32 reference (bf16-streaming tolerance) and a
    # dtype-matched reference (tight tolerance).
    ref_f32 = reference_forward_f32(x, params)
    ref_mat = reference_forward_matched(x, params)
    err_f32 = float(jnp.max(jnp.abs(out - ref_f32)))
    err_mat = float(jnp.max(jnp.abs(out - ref_mat)))
    assert jnp.allclose(out, ref_f32, atol=3e-2, rtol=3e-2), err_f32
    assert jnp.allclose(out, ref_mat, atol=2e-3, rtol=2e-3), err_mat

    print("KERNEL_OK")
</pallas_src>

<mosaic_0001>
module attributes {stable_mosaic.version = 11 : i64} {
  func.func @mlp_kernel(%arg0: i32, %arg1: memref<256x512xf32, #tpu.memory_space<vmem>>, %arg2: memref<512x128xbf16, #tpu.memory_space<vmem>>, %arg3: memref<1x128xf32, #tpu.memory_space<vmem>>, %arg4: memref<128x64xbf16, #tpu.memory_space<vmem>>, %arg5: memref<1x64xf32, #tpu.memory_space<vmem>>, %arg6: memref<64x1xf32, #tpu.memory_space<vmem>>, %arg7: memref<1xf32, #tpu.memory_space<smem>>, %arg8: memref<256x1xf32, #tpu.memory_space<vmem>>) attributes {dimension_semantics = [#tpu.dimension_semantics<parallel>], iteration_bounds = array<i64: 2>, scalar_prefetch = 0 : i64, scratch_operands = 0 : i64, tpu.core_type = #tpu.core_type<tc>, window_params = [{transform_indices = @transform_0, window_bounds = array<i64: 256, 512>}, {pipeline_mode = #tpu.pipeline_mode<synchronous>, transform_indices = @transform_1, window_bounds = array<i64: 512, 128>}, {pipeline_mode = #tpu.pipeline_mode<synchronous>, transform_indices = @transform_2, window_bounds = array<i64: 1, 128>}, {pipeline_mode = #tpu.pipeline_mode<synchronous>, transform_indices = @transform_3, window_bounds = array<i64: 128, 64>}, {pipeline_mode = #tpu.pipeline_mode<synchronous>, transform_indices = @transform_4, window_bounds = array<i64: 1, 64>}, {pipeline_mode = #tpu.pipeline_mode<synchronous>, transform_indices = @transform_5, window_bounds = array<i64: 64, 1>}, {transform_indices = @transform_6, window_bounds = array<i64: 1>}, {transform_indices = @transform_7, window_bounds = array<i64: 256, 1>}]} {
    %c0 = arith.constant 0 : index
    %c0_0 = arith.constant 0 : index
    %0 = vector.load %arg1[%c0, %c0_0] : memref<256x512xf32, #tpu.memory_space<vmem>>, vector<256x512xf32>
    %1 = arith.truncf %0 : vector<256x512xf32> to vector<256x512xbf16>
    %c0_1 = arith.constant 0 : index
    %c0_2 = arith.constant 0 : index
    %2 = vector.load %arg2[%c0_1, %c0_2] : memref<512x128xbf16, #tpu.memory_space<vmem>>, vector<512x128xbf16>
    %cst = arith.constant dense<0.000000e+00> : vector<256x128xf32>
    %3 = tpu.matmul %1, %2, %cst {dimension_numbers = #tpu.dot_dimension_numbers<[1], [0], [0], [1], [0, 0, 1, 1], [], []>} : vector<256x512xbf16>, vector<512x128xbf16>, vector<256x128xf32> -> vector<256x128xf32>
    %c0_3 = arith.constant 0 : index
    %c0_4 = arith.constant 0 : index
    %4 = vector.load %arg3[%c0_3, %c0_4] : memref<1x128xf32, #tpu.memory_space<vmem>>, vector<1x128xf32>
    %5 = vector.broadcast %4 : vector<1x128xf32> to vector<256x128xf32>
    %6 = arith.addf %3, %5 : vector<256x128xf32>
    %cst_5 = arith.constant 0.000000e+00 : f32
    %7 = vector.broadcast %cst_5 : f32 to vector<256x128xf32>
    %8 = arith.maximumf %6, %7 : vector<256x128xf32>
    %9 = arith.truncf %8 : vector<256x128xf32> to vector<256x128xbf16>
    %c0_6 = arith.constant 0 : index
    %c0_7 = arith.constant 0 : index
    %10 = vector.load %arg4[%c0_6, %c0_7] : memref<128x64xbf16, #tpu.memory_space<vmem>>, vector<128x64xbf16>
    %cst_8 = arith.constant dense<0.000000e+00> : vector<256x64xf32>
    %11 = tpu.matmul %9, %10, %cst_8 {dimension_numbers = #tpu.dot_dimension_numbers<[1], [0], [0], [1], [0, 0, 1, 1], [], []>} : vector<256x128xbf16>, vector<128x64xbf16>, vector<256x64xf32> -> vector<256x64xf32>
    %c0_9 = arith.constant 0 : index
    %c0_10 = arith.constant 0 : index
    %12 = vector.load %arg5[%c0_9, %c0_10] : memref<1x64xf32, #tpu.memory_space<vmem>>, vector<1x64xf32>
    %13 = vector.broadcast %12 : vector<1x64xf32> to vector<256x64xf32>
    %14 = arith.addf %11, %13 : vector<256x64xf32>
    %cst_11 = arith.constant 0.000000e+00 : f32
    %15 = vector.broadcast %cst_11 : f32 to vector<256x64xf32>
    %16 = arith.maximumf %14, %15 : vector<256x64xf32>
    %c0_12 = arith.constant 0 : index
    %c0_13 = arith.constant 0 : index
    %17 = vector.load %arg6[%c0_12, %c0_13] : memref<64x1xf32, #tpu.memory_space<vmem>>, vector<64x1xf32>
    %cst_14 = arith.constant dense<0.000000e+00> : vector<256x1xf32>
    %18 = tpu.matmul %16, %17, %cst_14 {dimension_numbers = #tpu.dot_dimension_numbers<[1], [0], [0], [1], [0, 0, 1, 1], [], []>} : vector<256x64xf32>, vector<64x1xf32>, vector<256x1xf32> -> vector<256x1xf32>
    %c0_15 = arith.constant 0 : index
    %19 = memref.load %arg7[%c0_15] : memref<1xf32, #tpu.memory_space<smem>>
    %20 = vector.broadcast %19 : f32 to vector<256x1xf32>
    %21 = arith.addf %18, %20 : vector<256x1xf32>
    %c0_16 = arith.constant 0 : index
    %c0_17 = arith.constant 0 : index
    %22 = vector.load %arg8[%c0_16, %c0_17] : memref<256x1xf32, #tpu.memory_space<vmem>>, vector<256x1xf32>
    tpu.vector_store %arg8[%c0_16, %c0_17], %21 {strides = array<i32>} : memref<256x1xf32, #tpu.memory_space<vmem>>, vector<256x1xf32>,
    return
  }
  func.func @transform_0(%arg0: i32) -> (i32, i32) {
    %c0_i32 = arith.constant 0 : i32
    %c0_i32_0 = arith.constant 0 : i32
    return %arg0, %c0_i32 : i32, i32
  }
  func.func @transform_1(%arg0: i32) -> (i32, i32) {
    %c0_i32 = arith.constant 0 : i32
    %c0_i32_0 = arith.constant 0 : i32
    %c0_i32_1 = arith.constant 0 : i32
    return %c0_i32, %c0_i32_0 : i32, i32
  }
  func.func @transform_2(%arg0: i32) -> (i32, i32) {
    %c0_i32 = arith.constant 0 : i32
    %c0_i32_0 = arith.constant 0 : i32
    %c0_i32_1 = arith.constant 0 : i32
    return %c0_i32, %c0_i32_0 : i32, i32
  }
  func.func @transform_3(%arg0: i32) -> (i32, i32) {
    %c0_i32 = arith.constant 0 : i32
    %c0_i32_0 = arith.constant 0 : i32
    %c0_i32_1 = arith.constant 0 : i32
    return %c0_i32, %c0_i32_0 : i32, i32
  }
  func.func @transform_4(%arg0: i32) -> (i32, i32) {
    %c0_i32 = arith.constant 0 : i32
    %c0_i32_0 = arith.constant 0 : i32
    %c0_i32_1 = arith.constant 0 : i32
    return %c0_i32, %c0_i32_0 : i32, i32
  }
  func.func @transform_5(%arg0: i32) -> (i32, i32) {
    %c0_i32 = arith.constant 0 : i32
    %c0_i32_0 = arith.constant 0 : i32
    %c0_i32_1 = arith.constant 0 : i32
    return %c0_i32, %c0_i32_0 : i32, i32
  }
  func.func @transform_6(%arg0: i32) -> i32 {
    %c0_i32 = arith.constant 0 : i32
    %c0_i32_0 = arith.constant 0 : i32
    return %c0_i32 : i32
  }
  func.func @transform_7(%arg0: i32) -> (i32, i32) {
    %c0_i32 = arith.constant 0 : i32
    %c0_i32_0 = arith.constant 0 : i32
    return %arg0, %c0_i32 : i32, i32
  }
}

</mosaic_0001>

<bundles_post_ra>
// kernel: tpu_custom_call.1
= control target key start
LH: loop header
LB: loop body
LE: loop exit
PB: predicated region body
PF: predicated region fallthrough
CT: control target
= control target key end

     0   :  { %s3664_s0 = inlined_call_operand.hbm [shape: f32[300,512], index: 0, kind: input, shape index: {}]   ;;  %s3665_s1 = inlined_call_operand.hbm [shape: bf16[512,128], index: 1, kind: input, shape index: {}]   ;;  %s3666_s2 = inlined_call_operand.vmem [shape: f32[1,128], index: 2, kind: input, shape index: {}]   ;;  %s3667_s3 = inlined_call_operand.vmem [shape: bf16[128,64], index: 3, kind: input, shape index: {}]   ;;  %s3668_s4 = inlined_call_operand.vmem [shape: f32[1,64], index: 4, kind: input, shape index: {}]   ;;  %s3669_s5 = inlined_call_operand.vmem [shape: f32[64,1], index: 5, kind: input, shape index: {}]   ;;  %s3670_s6 = inlined_call_operand.<no memory space> [shape: f32[1], index: 6, kind: input, shape index: {}]   ;;  %s3671_s7 = inlined_call_operand.vmem [shape: f32[300,1], index: 7, kind: output, shape index: {}]  }
   0x1   :  { %12 = sst [smem:[#allocation2]] %s3670_s6 }
   0x2   :  { %13 = vsyncpa [#allocation4], 0 }
   0x3   :  { %15 = vsyncpa [#allocation4 + $0x1], 0 }
   0x4   :  { %16 = vsyncpa [#allocation6], 0  ;;  %s3015_s26 = smov 0   ;;  %s3017_s27 = smov 0  }
   0x5   :  { %s3019_s28 = smov 0   ;;  %s3021_s29 = smov 0  }
   0x6 LB: > { %s3034_s6 = sadd.s32 4294967295, %s2932_s29   ;;  %s3037_s30 = sadd.s32 1, %s2932_s29   ;;  %s2932_s29 = sphi %s3021_s29, %s3687_s29   ;;  %s2928_s28 = sphi %s3019_s28, %s3686_s28   ;;  %s2924_s27 = sphi %s3017_s27, %s3685_s27   ;;  %s2920_s26 = sphi %s3015_s26, %s3684_s26  }
   0x7   : > { %s26_s8 = ssub.s32 %s2932_s29, %s3037_s30  ;;  %s29_s9 = sadd.s32 1, %s2928_s28 }
   0x8   : > { %p27_p0 = scmp.eq.s32.totalorder %s26_s8, 0  ;;  %p36_p1 = scmp.ne.s32.totalorder %s2928_s28, %s2924_s27 }
   0x9   : > { %p37_p2 = scmp.eq.s32.totalorder %s2932_s29, 0  ;;  %p42_p3 = scmp.ne.s32.totalorder %s2924_s27, %s2920_s26 }
   0xa   : > { %s3047_s10 = scalar_select %p27_p0, %s2928_s28, %s29_s9  }
   0xb   : > { %p3049_p4 = por %p37_p2, %p36_p1  ;;  %p43_p5 = scmp.eq.s32.totalorder %s3034_s6, 0 }
   0xc   : > { %p192_p6 = scmp.eq.s32.totalorder %s3034_s6, 1  ;;  %p2145_p7 = scmp.ge.s32.totalorder %s2932_s29, 1 }
   0xd   : > { %p3058_p8 = por %p43_p5, %p42_p3  ;;  %p205_p9 = scmp.lt.s32.totalorder %s2932_s29, 3 }
   0xe   : > { %p3063_p10 = por %p192_p6, %p36_p1  ;;  %s2966_s15 = smov [#allocation5]  }
   0xf   : > { %s3674_s12 = scalar_select %p3058_p8, 1, 0 }
  0x10   : > { %s3675_s13 = scalar_select %p3063_p10, 1, 0 }
  0x11   : > { %p3067_p11 = pnand %p2145_p7, %p205_p9  ;;  %s217_s16 = sshll.u32 %s2966_s15, 4  ;;  %s218_s16 = int_to_ptr.vmem [resolvable:$true] %s217_s16 }
  0x12   : > { %s2821_s17 = scalar_lea.vmem %s218_s16, 4096  ;;  %p2829_p6 = scmp.lt.s32.totalorder %s218_s16, %s218_s16 }
  0x13   : > { %p2663_p12 = pneg %p3067_p11  ;;  %p2822_p2 = scmp.ne.s32.totalorder %s218_s16, %s2821_s17 }
  0x14   : > { %p2830_p8 = scmp.lt.s32.totalorder %s2821_s17, %s2821_s17 }
  0x15   : > { %p2664_p13 = pnand %p2663_p12, %p43_p5 }
  0x16   : > { %p2831_p10 = por %p2830_p8, %p2829_p6 }
  0x17   : > { %p2812_p0 = pneg %p2664_p13 }
  0x19   : > { %p2824_p3 = pnand %p2822_p2, %p2812_p0 }
  0x1b   : > { %p2825_p1 = pneg %p2824_p3 }
  0x1d   : > { %p2832_p7 = pnand %p2831_p10, %p2825_p1 }
  0x1f   : > { %2835 = shalt.err (!%p2832_p7)
}
  0x20   : > { %s2967_s18 = smov 64   ;;  %s2968_s19 = smov 4  }
  0x21   : > { %2666 = dma.hbm_to_vmem [thread:$0]  (!%p2664_p13), %s3665_s1, 4096, %s218_s16, [#allocation6], %s2967_s18, %s2967_s18, %s2968_s19  }
  0x22   : > { %p2147_p9 = scmp.ge.s32.totalorder %s2932_s29, 2 }
  0x24   : > { %242 = sbr.rel (%p2147_p9) target bundleno = 73 (0x49), region = 40 }
  0x29   : > { %245 = sbr.rel (!%p3049_p4) target bundleno = 73 (0x49), region = 44  ;;  %s246_s22 = sand.u32 (%p3049_p4), 1, %s2928_s28  }
  0x2a   : > { %s2149_s23 = sshll.u32 (%p3049_p4), %s2932_s29, 5  ;;  %s2148_s24 = sshll.u32 (%p3049_p4), %s246_s22, 10 }
  0x2b   : > { %s252_s25 = ssub.s32 (%p3049_p4), 38, %s2149_s23  ;;  %s3086_s9 = scalar_lea.sflag (%p3049_p4), [#allocation4], %s246_s22 }
  0x2c   : > { %p253_p8 = scmp.lt.s32.totalorder (%p3049_p4), %s252_s25, 32  ;;  %s250_s15 = scalar_lea.vmem (%p3049_p4), [#allocation3], %s2148_s24 }
  0x2e   : > { %s3689_s25 = smov (!%p253_p8, %s252_s25), 32 }
  0x2f   : > { %s3083_s26 = sshll.u32 %s3689_s25, 9 }
  0x30   : > { %s258_s8 = ssub.s32 16384, %s3083_s26 }
  0x31   : > { %259 = vsyncadd %s3086_s9, %s258_s8  ;;  %p2152_p4 = scmp.ne.s32.totalorder %s3083_s26, 0  ;;  %s2254_s11 = sshll.u32 %s2932_s29, 14 }
  0x32   : > { %s3094_s18 = scalar_lea.hbm %s3664_s0, %s2254_s11  ;;  %s265_s19 = sshll.u32 %s250_s15, 4  ;;  %s3096_s19 = int_to_ptr.vmem [resolvable:$true] %s265_s19 }
  0x33   : > { %s2836_s20 = scalar_lea.hbm %s3094_s18, %s3083_s26  ;;  %s2840_s29 = scalar_lea.hbm %s3664_s0, 19456 }
  0x34   : > { %p2837_p10 = scmp.ne.s32.totalorder %s3094_s18, %s2836_s20  ;;  %p2841_p0 = scmp.lt.s32.totalorder %s3094_s18, %s3664_s0 }
  0x35   : > { %p2842_p2 = scmp.lt.s32.totalorder %s2840_s29, %s2836_s20 }
  0x36   : > { %p2838_p12 = pnand %p2837_p10, %p2152_p4 }
  0x37   : > { %p2843_p3 = por %p2842_p2, %p2841_p0 }
  0x38   : > { %p2839_p13 = pneg %p2838_p12 }
  0x3a   : > { %p2844_p1 = pnand %p2843_p3, %p2839_p13 }
  0x3c   : > { %2847 = shalt.err (!%p2844_p1)
}
  0x3d   : > { %s2848_s25 = scalar_lea.vmem %s3096_s19, %s3083_s26  ;;  %s2969_s8 = smov [#allocation3]  }
  0x3e   : > { %p2849_p6 = scmp.ne.s32.totalorder %s3096_s19, %s2848_s25  ;;  %s2852_s15 = sshll.u32 %s2969_s8, 4  ;;  %s2853_s15 = int_to_ptr.vmem [resolvable:$false] %s2852_s15 }
  0x3f   : > { %s2854_s11 = scalar_lea.vmem %s2853_s15, 32768  ;;  %p2855_p8 = scmp.lt.s32.totalorder %s3096_s19, %s2853_s15 }
  0x40   : > { %p2850_p7 = pnand %p2849_p6, %p2152_p4  ;;  %p2856_p10 = scmp.lt.s32.totalorder %s2854_s11, %s2848_s25 }
  0x42   : > { %p2851_p9 = pneg %p2850_p7  ;;  %p2857_p12 = por %p2856_p10, %p2855_p8 }
  0x44   : > { %p2858_p0 = pnand %p2857_p12, %p2851_p9 }
  0x46   : > { %2861 = shalt.err (!%p2858_p0)
}
  0x47   : > { %s2970_s16 = smov 512   ;;  %s2971_s17 = smov 32  }
  0x48   : > { %271 = dma.hbm_to_vmem [thread:$0]  (%p2152_p4), %s3094_s18, %s3083_s26, %s3096_s19, %s3086_s9, %s2970_s16, %s2970_s16, %s2971_s17  }
  0x49 PF: > { %277 = sbr.rel (%p3067_p11) target bundleno = 897 (0x381), region = 48  ;;  %s3125_s20 = sand.u32 (!%p3067_p11), 1, %s2924_s27  }
  0x4a   : > { %s2158_s21 = sshll.u32 (!%p3067_p11), %s3125_s20, 10  ;;  %s280_s22 = scalar_lea.sflag (!%p3067_p11), [#allocation4], %s3125_s20 }
  0x4b   : > { %s3129_s29 = scalar_lea.vmem (!%p3067_p11), [#allocation3], %s2158_s21  ;;  %p3677_p13 = scmp.ne.s32.totalorder (!%p3067_p11), %s3674_s12, 0 }
  0x4e   : > { %2911 = dma.done.wait (%p3677_p13), %s280_s22, 16384  }
  0x4f   : > { %2913 = vsyncadd (%p3677_p13), %s280_s22, 4294950912 }
  0x50   : > { %2915 = dma.done.wait (%p43_p5), [#allocation6], 4096  }
  0x51   : > { %2917 = vsyncadd (%p43_p5), [#allocation6], 4294963200  ;;  %v2770_v0 = vld [vmem:[#allocation5 + $0x78] sm:$0xff]   ;;  %v2774_v4 = vld [vmem:[#allocation5 + $0x70] sm:$0xff]   ;;  %vm1428_vm0 = vcmask 523264   ;;  %s1426_s26 = sld [smem:[#allocation2]] }
  0x52   : > { %v2771_v1 = vld [vmem:[#allocation5 + $0xf8] sm:$0xff]   ;;  %2258 = vmatprep.subr.bf16.mxu0 %v2770_v0  ;;  %v2775_v5 = vld [vmem:[#allocation5 + $0xf0] sm:$0xff]   ;;  %v2778_v8 = vld [vmem:[#allocation5 + $0x68] sm:$0xff]   ;;  %s2160_s9 = sshll.u32 %s3125_s20, 8  ;;  %vm1750_vm1 = vcmask 7168   ;;  %p3678_p5 = scmp.ne.s32.totalorder %s3675_s13, 0 }
  0x53   : > { %v2772_v2 = vld [vmem:[#allocation5 + $0x38] sm:$0xff]   ;;  %2370 = vmatprep.subr.bf16.mxu1 %v2771_v1  ;;  %v2776_v6 = vld [vmem:[#allocation5 + $0x30] sm:$0xff]   ;;  %v2779_v9 = vld [vmem:[#allocation5 + $0xe8] sm:$0xff]   ;;  %s3425_s18 = scalar_lea.vmem [#allocation7], %s2160_s9   ;;  %s2236_s20 = sshll.u32 (%p3678_p5), %s3034_s6, 5 }
  0x54   : > { %v2773_v3 = vld [vmem:[#allocation5 + $0xb8] sm:$0xff]   ;;  %2259 = vmatpush3.bf16.msra.mxu0 %v2772_v2  ;;  %v2777_v7 = vld [vmem:[#allocation5 + $0xb0] sm:$0xff]   ;;  %v2780_v10 = vld [vmem:[#allocation5 + $0x28] sm:$0xff]   ;;  %s2255_s19 = sshll.u32 (%p3678_p5), %s3034_s6, 8  ;;  %s1791_s23 = ssub.s32 (%p3678_p5), 38, %s2236_s20 }
  0x55   : > { %2371 = vmatpush3.bf16.msra.mxu1 %v2773_v3  ;;  %2260 = vmatprep.subr.bf16.mxu0 %v2774_v4  ;;  %v2781_v11 = vld [vmem:[#allocation5 + $0xa8] sm:$0xff]   ;;  %v2782_v12 = vld [vmem:[#allocation5 + $0x60] sm:$0xff]   ;;  %v2786_v16 = vld [vmem:[#allocation5 + $0x58] sm:$0xff]   ;;  %s3529_s8 = scalar_lea.vmem (%p3678_p5), %s3671_s7, %s2255_s19   ;;  %p1792_p11 = scmp.lt.s32.totalorder (%p3678_p5), %s1791_s23, 32 }
  0x56   : > { %2372 = vmatprep.subr.bf16.mxu1 %v2775_v5  ;;  %v2783_v13 = vld [vmem:[#allocation5 + $0xe0] sm:$0xff]   ;;  %v2787_v17 = vld [vmem:[#allocation5 + $0xd8] sm:$0xff]   ;;  %v2790_v20 = vld [vmem:[#allocation5 + $0x50] sm:$0xff]  }
  0x57   : > { %v2784_v14 = vld [vmem:[#allocation5 + $0x20] sm:$0xff]   ;;  %v2788_v18 = vld [vmem:[#allocation5 + $0x18] sm:$0xff]   ;;  %v2791_v21 = vld [vmem:[#allocation5 + $0xd0] sm:$0xff]  }
  0x58   : > { %2261 = vmatpush3.bf16.msra.mxu0 %v2776_v6  ;;  %v2785_v15 = vld [vmem:[#allocation5 + $0xa0] sm:$0xff]   ;;  %v2789_v19 = vld [vmem:[#allocation5 + $0x98] sm:$0xff]   ;;  %v2792_v22 = vld [vmem:[#allocation5 + $0x10] sm:$0xff]  }
  0x59   : > { %2373 = vmatpush3.bf16.msra.mxu1 %v2777_v7  ;;  %2262 = vmatprep.subr.bf16.mxu0 %v2778_v8  ;;  %v2793_v23 = vld [vmem:[#allocation5 + $0x90] sm:$0xff]   ;;  %v2794_v24 = vld [vmem:[#allocation5 + $0x48] sm:$0xff]   ;;  %v2798_v28 = vld [vmem:[#allocation5 + $0x40] sm:$0xff]  }
  0x5a   : > { %2374 = vmatprep.subr.bf16.mxu1 %v2779_v9  ;;  %v2795_v25 = vld [vmem:[#allocation5 + $0xc8] sm:$0xff]   ;;  %v2799_v29 = vld [vmem:[#allocation5 + $0xc0] sm:$0xff]   ;;  %v332_v34 = vld [vmem:[%s3129_s29 + $0x18] sm:$0xff] }
  0x5b   : > { %v2796_v26 = vld [vmem:[#allocation5 + $0x8] sm:$0xff]   ;;  %v2800_v30 = vld [vmem:[#allocation5] sm:$0xff]   ;;  %v336_v36 = vld [vmem:[%s3129_s29 + $0x38] sm:$0xff] }
  0x5c   : > { %2263 = vmatpush3.bf16.msra.mxu0 %v2780_v10  ;;  %v2797_v27 = vld [vmem:[#allocation5 + $0x88] sm:$0xff]   ;;  %v2801_v31 = vld [vmem:[#allocation5 + $0x80] sm:$0xff]   ;;  %v460_v39 = vpack.c.bf16 %v336_v36, %v332_v34  ;;  %v331_v41 = vld [vmem:[%s3129_s29 + $0x10] sm:$0xff] }
  0x5d   : > { %2375 = vmatpush3.bf16.msra.mxu1 %v2781_v11  ;;  %2264 = vmatprep.subr.bf16.mxu0 %v2782_v12  ;;  %v330_v32 = vld [vmem:[%s3129_s29 + $0x8] sm:$0xff]  ;;  %v329_v37 = vld [vmem:[%s3129_s29] sm:$0xff]  ;;  %v335_v42 = vld [vmem:[%s3129_s29 + $0x30] sm:$0xff] }
  0x5e   : > { %2376 = vmatprep.subr.bf16.mxu1 %v2783_v13  ;;  %v334_v33 = vld [vmem:[%s3129_s29 + $0x28] sm:$0xff]  ;;  %v333_v38 = vld [vmem:[%s3129_s29 + $0x20] sm:$0xff]  ;;  %v459_v44 = vpack.c.bf16 %v335_v42, %v331_v41  ;;  %v340_v46 = vld [vmem:[%s3129_s29 + $0x58] sm:$0xff]  ;;  %977 = vmatprep.mubr.bf16.mxu1 %v460_v39 }
  0x5f   : > { %v458_v35 = vpack.c.bf16 %v334_v33, %v330_v32  ;;  %v457_v40 = vpack.c.bf16 %v333_v38, %v329_v37  ;;  %v338_v43 = vld [vmem:[%s3129_s29 + $0x48] sm:$0xff]  ;;  %v344_v47 = vld [vmem:[%s3129_s29 + $0x78] sm:$0xff]  ;;  %v337_v50 = vld [vmem:[%s3129_s29 + $0x40] sm:$0xff] }
  0x60   : > { %2265 = vmatpush3.bf16.msra.mxu0 %v2784_v14  ;;  %v342_v45 = vld [vmem:[%s3129_s29 + $0x68] sm:$0xff]  ;;  %v464_v49 = vpack.c.bf16 %v344_v47, %v340_v46  ;;  %v341_v51 = vld [vmem:[%s3129_s29 + $0x60] sm:$0xff]  ;;  %v339_v52 = vld [vmem:[%s3129_s29 + $0x50] sm:$0xff] }
  0x61   : > { %2377 = vmatpush3.bf16.msra.mxu1 %v2785_v15  ;;  %2266 = vmatprep.subr.bf16.mxu0 %v2786_v16  ;;  %v462_v48 = vpack.c.bf16 %v342_v45, %v338_v43  ;;  %v343_v53 = vld [vmem:[%s3129_s29 + $0x70] sm:$0xff]  ;;  %v346_v54 = vld [vmem:[%s3129_s29 + $0x88] sm:$0xff]  ;;  %v348_v56 = vld [vmem:[%s3129_s29 + $0x98] sm:$0xff]  ;;  %v461_v58 = vpack.c.bf16 %v341_v51, %v337_v50 }
  0x62   : > { %2378 = vmatprep.subr.bf16.mxu1 %v2787_v17  ;;  %816 = vmatprep.mubr.bf16.mxu0 %v458_v35  ;;  %v350_v55 = vld [vmem:[%s3129_s29 + $0xa8] sm:$0xff]  ;;  %v352_v57 = vld [vmem:[%s3129_s29 + $0xb8] sm:$0xff]  ;;  %v463_v59 = vpack.c.bf16 %v343_v53, %v339_v52  ;;  %v345_v62 = vld [vmem:[%s3129_s29 + $0x80] sm:$0xff] }
  0x63   : > { %v466_v60 = vpack.c.bf16 %v350_v55, %v346_v54  ;;  %v468_v61 = vpack.c.bf16 %v352_v57, %v348_v56  ;;  %v349_v63 = vld [vmem:[%s3129_s29 + $0xa0] sm:$0xff]  ;;  %v347_v0 = vld [vmem:[%s3129_s29 + $0x90] sm:$0xff]  ;;  %v354_v2 = vld [vmem:[%s3129_s29 + $0xc8] sm:$0xff] }
  0x64   : > { %2267 = vmatpush3.bf16.msra.mxu0 %v2788_v18  ;;  %v351_v1 = vld [vmem:[%s3129_s29 + $0xb0] sm:$0xff]  ;;  %v358_v3 = vld [vmem:[%s3129_s29 + $0xe8] sm:$0xff]  ;;  %v356_v4 = vld [vmem:[%s3129_s29 + $0xd8] sm:$0xff]  ;;  %v465_v6 = vpack.c.bf16 %v349_v63, %v345_v62 }
  0x65   : > { %2379 = vmatpush3.bf16.msra.mxu1 %v2789_v19  ;;  %2268 = vmatprep.subr.bf16.mxu0 %v2790_v20  ;;  %v360_v5 = vld [vmem:[%s3129_s29 + $0xf8] sm:$0xff]  ;;  %v467_v7 = vpack.c.bf16 %v351_v1, %v347_v0  ;;  %v470_v8 = vpack.c.bf16 %v358_v3, %v354_v2  ;;  %v353_v10 = vld [vmem:[%s3129_s29 + $0xc0] sm:$0xff]  ;;  %v355_v12 = vld [vmem:[%s3129_s29 + $0xd0] sm:$0xff] }
  0x66   : > { %2380 = vmatprep.subr.bf16.mxu1 %v2791_v21  ;;  %v472_v9 = vpack.c.bf16 %v360_v5, %v356_v4  ;;  %v357_v11 = vld [vmem:[%s3129_s29 + $0xe0] sm:$0xff]  ;;  %v359_v13 = vld [vmem:[%s3129_s29 + $0xf0] sm:$0xff]  ;;  %v362_v14 = vld [vmem:[%s3129_s29 + $0x108] sm:$0xff] }
  0x67   : > { %v366_v15 = vld [vmem:[%s3129_s29 + $0x128] sm:$0xff]  ;;  %v364_v16 = vld [vmem:[%s3129_s29 + $0x118] sm:$0xff]  ;;  %v469_v18 = vpack.c.bf16 %v357_v11, %v353_v10  ;;  %v471_v19 = vpack.c.bf16 %v359_v13, %v355_v12  ;;  %v369_v34 = vld [vmem:[%s3129_s29 + $0x140] sm:$0xff] }
  0x68   : > { %2269 = vmatpush3.bf16.msra.mxu0 %v2792_v22  ;;  %v368_v17 = vld [vmem:[%s3129_s29 + $0x138] sm:$0xff]  ;;  %v474_v20 = vpack.c.bf16 %v366_v15, %v362_v14  ;;  %v361_v22 = vld [vmem:[%s3129_s29 + $0x100] sm:$0xff]  ;;  %v371_v36 = vld [vmem:[%s3129_s29 + $0x150] sm:$0xff] }
  0x69   : > { %2381 = vmatpush3.bf16.msra.mxu1 %v2793_v23  ;;  %2270 = vmatprep.subr.bf16.mxu0 %v2794_v24  ;;  %v476_v21 = vpack.c.bf16 %v368_v17, %v364_v16  ;;  %v365_v23 = vld [vmem:[%s3129_s29 + $0x120] sm:$0xff]  ;;  %v363_v24 = vld [vmem:[%s3129_s29 + $0x110] sm:$0xff]  ;;  %v378_v38 = vld [vmem:[%s3129_s29 + $0x188] sm:$0xff] }
  0x6a   : > { %2382 = vmatprep.subr.bf16.mxu1 %v2795_v25  ;;  %v367_v25 = vld [vmem:[%s3129_s29 + $0x130] sm:$0xff]  ;;  %v373_v35 = vld [vmem:[%s3129_s29 + $0x160] sm:$0xff]  ;;  %v382_v39 = vld [vmem:[%s3129_s29 + $0x1a8] sm:$0xff] }
  0x6b   : > { %v375_v37 = vld [vmem:[%s3129_s29 + $0x170] sm:$0xff]  ;;  %v384_v41 = vld [vmem:[%s3129_s29 + $0x1b8] sm:$0xff]  ;;  %v477_v42 = vpack.c.bf16 %v373_v35, %v369_v34  ;;  %v377_v46 = vld [vmem:[%s3129_s29 + $0x180] sm:$0xff] }
  0x6c   : > { %2271 = vmatpush3.bf16.msra.mxu0 %v2796_v26  ;;  %v370_v26 = vld [vmem:[%s3129_s29 + $0x148] sm:$0xff]  ;;  %v479_v43 = vpack.c.bf16 %v375_v37, %v371_v36  ;;  %v381_v47 = vld [vmem:[%s3129_s29 + $0x1a0] sm:$0xff]  ;;  %v383_v50 = vld [vmem:[%s3129_s29 + $0x1b0] sm:$0xff] }
  0x6d   : > { %2383 = vmatpush3.bf16.msra.mxu1 %v2797_v27  ;;  %2272 = vmatprep.subr.bf16.mxu0 %v2798_v28  ;;  %v374_v27 = vld [vmem:[%s3129_s29 + $0x168] sm:$0xff]  ;;  %v372_v28 = vld [vmem:[%s3129_s29 + $0x158] sm:$0xff]  ;;  %v2803_v53 = vld [vmem:[%s3667_s3 + $0x30] sm:$0xff]   ;;  %v481_v57 = vpack.c.bf16 %v381_v47, %v377_v46 }
  0x6e   : > { %2384 = vmatprep.subr.bf16.mxu1 %v2799_v29  ;;  %v376_v29 = vld [vmem:[%s3129_s29 + $0x178] sm:$0xff]  ;;  %v478_v32 = vpack.c.bf16 %v374_v27, %v370_v26  ;;  %v386_v51 = vld [vmem:[%s3129_s29 + $0x1c8] sm:$0xff]  ;;  %v389_v62 = vld [vmem:[%s3129_s29 + $0x1e0] sm:$0xff] }
  0x6f   : > { %v480_v33 = vpack.c.bf16 %v376_v29, %v372_v28  ;;  %v390_v52 = vld [vmem:[%s3129_s29 + $0x1e8] sm:$0xff]  ;;  %v388_v54 = vld [vmem:[%s3129_s29 + $0x1d8] sm:$0xff]  ;;  %v387_v63 = vld [vmem:[%s3129_s29 + $0x1d0] sm:$0xff] }
  0x70   : > { %2273 = vmatpush3.bf16.msra.mxu0 %v2800_v30  ;;  %v473_v30 = vpack.c.bf16 %v365_v23, %v361_v22  ;;  %v392_v55 = vld [vmem:[%s3129_s29 + $0x1f8] sm:$0xff]  ;;  %v2804_v56 = vld [vmem:[%s3667_s3 + $0x28] sm:$0xff]   ;;  %v391_v0 = vld [vmem:[%s3129_s29 + $0x1f0] sm:$0xff] }
  0x71   : > { %2385 = vmatpush3.bf16.msra.mxu1 %v2801_v31  ;;  %v475_v31 = vpack.c.bf16 %v367_v25, %v363_v24  ;;  %v394_v1 = vld [vmem:[%s3129_s29 + $0x208] sm:$0xff]  ;;  %v396_v3 = vld [vmem:[%s3129_s29 + $0x218] sm:$0xff]  ;;  %v397_v10 = vld [vmem:[%s3129_s29 + $0x220] sm:$0xff] }
  0x72   : > { %v398_v2 = vld [vmem:[%s3129_s29 + $0x228] sm:$0xff]  ;;  %v400_v4 = vld [vmem:[%s3129_s29 + $0x238] sm:$0xff]  ;;  %v395_v11 = vld [vmem:[%s3129_s29 + $0x210] sm:$0xff] }
  0x73   : > { %817 = vmatmul.mubr.bf16.vlgmr.msra.gmra.mxu0 %v457_v40  ;;  %v380_v40 = vld [vmem:[%s3129_s29 + $0x198] sm:$0xff]  ;;  %v399_v12 = vld [vmem:[%s3129_s29 + $0x230] sm:$0xff]  ;;  %v402_v13 = vld [vmem:[%s3129_s29 + $0x248] sm:$0xff] }
  0x74   : > { %978 = vmatmul.mubr.bf16.vlgmr.msra.gmra.mxu1 %v459_v44  ;;  %824 = vmatprep.mubr.bf16.mxu0 %v462_v48  ;;  %v482_v44 = vpack.c.bf16 %v382_v39, %v378_v38  ;;  %v484_v45 = vpack.c.bf16 %v384_v41, %v380_v40  ;;  %v2802_v48 = vld [vmem:[%s3667_s3 + $0x38] sm:$0xff]   ;;  %v406_v14 = vld [vmem:[%s3129_s29 + $0x268] sm:$0xff]  ;;  %v405_v22 = vld [vmem:[%s3129_s29 + $0x260] sm:$0xff] }
  0x75   : > { %985 = vmatprep.mubr.bf16.mxu1 %v464_v49  ;;  %v379_v49 = vld [vmem:[%s3129_s29 + $0x190] sm:$0xff]  ;;  %2546 = vmatprep.subr.bf16.mxu0 %v2802_v48  ;;  %v404_v15 = vld [vmem:[%s3129_s29 + $0x258] sm:$0xff]  ;;  %v2805_v24 = vld [vmem:[%s3667_s3 + $0x20] sm:$0xff]  }
  0x76   : > { %2547 = vmatpush3.bf16.msra.mxu0 %v2802_v48  ;;  %v408_v16 = vld [vmem:[%s3129_s29 + $0x278] sm:$0xff]  ;;  %v403_v23 = vld [vmem:[%s3129_s29 + $0x250] sm:$0xff]  ;;  %v410_v26 = vld [vmem:[%s3129_s29 + $0x288] sm:$0xff] }
  0x77   : > { %2548 = vmatprep.subr.bf16.mxu0 %v2803_v53  ;;  %v407_v25 = vld [vmem:[%s3129_s29 + $0x270] sm:$0xff]  ;;  %v414_v27 = vld [vmem:[%s3129_s29 + $0x2a8] sm:$0xff]  ;;  %v412_v28 = vld [vmem:[%s3129_s29 + $0x298] sm:$0xff] }
  0x78   : > { %v416_v29 = vld [vmem:[%s3129_s29 + $0x2b8] sm:$0xff]  ;;  %v409_v35 = vld [vmem:[%s3129_s29 + $0x280] sm:$0xff]  ;;  %v411_v37 = vld [vmem:[%s3129_s29 + $0x290] sm:$0xff] }
  0x79   : > { %v2806_v34 = vld [vmem:[%s3667_s3 + $0x18] sm:$0xff]   ;;  %v413_v36 = vld [vmem:[%s3129_s29 + $0x2a0] sm:$0xff]  ;;  %v415_v38 = vld [vmem:[%s3129_s29 + $0x2b0] sm:$0xff] }
  0x7a   : > { %2549 = vmatpush3.bf16.msra.mxu0 %v2803_v53  ;;  %v418_v39 = vld [vmem:[%s3129_s29 + $0x2c8] sm:$0xff]  ;;  %v420_v41 = vld [vmem:[%s3129_s29 + $0x2d8] sm:$0xff] }
  0x7b   : > { %825 = vmatmul.mubr.bf16.gmra.mxu0 %v461_v58  ;;  %v483_v58 = vpack.c.bf16 %v383_v50, %v379_v49  ;;  %2550 = vmatprep.subr.bf16.mxu0 %v2804_v56  ;;  %v422_v40 = vld [vmem:[%s3129_s29 + $0x2e8] sm:$0xff]  ;;  %v417_v49 = vld [vmem:[%s3129_s29 + $0x2c0] sm:$0xff] }
  0x7c   : > { %986 = vmatmul.mubr.bf16.gmra.mxu1 %v463_v59  ;;  %832 = vmatprep.mubr.bf16.mxu0 %v466_v60  ;;  %v486_v59 = vpack.c.bf16 %v390_v52, %v386_v51  ;;  %v488_v60 = vpack.c.bf16 %v392_v55, %v388_v54  ;;  %v502_v46 = vpack.c.bf16 %v422_v40, %v418_v39  ;;  %v2808_v48 = vld [vmem:[%s3667_s3 + $0x8] sm:$0xff]   ;;  %v421_v50 = vld [vmem:[%s3129_s29 + $0x2e0] sm:$0xff]  ;;  %v419_v51 = vld [vmem:[%s3129_s29 + $0x2d0] sm:$0xff] }
  0x7d   : > { %993 = vmatprep.mubr.bf16.mxu1 %v468_v61  ;;  %v385_v61 = vld [vmem:[%s3129_s29 + $0x1c0] sm:$0xff]  ;;  %v423_v52 = vld [vmem:[%s3129_s29 + $0x2f0] sm:$0xff]  ;;  %v426_v53 = vld [vmem:[%s3129_s29 + $0x308] sm:$0xff] }
  0x7e   : > { %2551 = vmatpush3.bf16.msra.mxu0 %v2804_v56  ;;  %v485_v5 = vpack.c.bf16 %v389_v62, %v385_v61  ;;  %v430_v54 = vld [vmem:[%s3129_s29 + $0x328] sm:$0xff]  ;;  %v428_v55 = vld [vmem:[%s3129_s29 + $0x318] sm:$0xff]  ;;  %v425_v62 = vld [vmem:[%s3129_s29 + $0x300] sm:$0xff] }
  0x7f   : > { %2552 = vmatprep.subr.bf16.mxu0 %v2805_v24  ;;  %v432_v56 = vld [vmem:[%s3129_s29 + $0x338] sm:$0xff] }
  0x80   : > { %v508_v61 = vpack.c.bf16 %v432_v56, %v428_v55 }
  0x82   : > { %2553 = vmatpush3.bf16.msra.mxu0 %v2805_v24  ;;  %v443_v24 = vld [vmem:[%s3129_s29 + $0x390] sm:$0xff] }
  0x83   : > { %833 = vmatmul.mubr.bf16.gmra.mxu0 %v465_v6  ;;  %v487_v6 = vpack.c.bf16 %v391_v0, %v387_v63  ;;  %2554 = vmatprep.subr.bf16.mxu0 %v2806_v34  ;;  %v429_v63 = vld [vmem:[%s3129_s29 + $0x320] sm:$0xff]  ;;  %v427_v0 = vld [vmem:[%s3129_s29 + $0x310] sm:$0xff] }
  0x84   : > { %994 = vmatmul.mubr.bf16.gmra.mxu1 %v467_v7  ;;  %840 = vmatprep.mubr.bf16.mxu0 %v470_v8  ;;  %v490_v7 = vpack.c.bf16 %v398_v2, %v394_v1  ;;  %v492_v8 = vpack.c.bf16 %v400_v4, %v396_v3  ;;  %v431_v1 = vld [vmem:[%s3129_s29 + $0x330] sm:$0xff]  ;;  %v434_v2 = vld [vmem:[%s3129_s29 + $0x348] sm:$0xff]  ;;  %v436_v4 = vld [vmem:[%s3129_s29 + $0x358] sm:$0xff] }
  0x85   : > { %1001 = vmatprep.mubr.bf16.mxu1 %v472_v9  ;;  %v393_v9 = vld [vmem:[%s3129_s29 + $0x200] sm:$0xff]  ;;  %v438_v3 = vld [vmem:[%s3129_s29 + $0x368] sm:$0xff] }
  0x86   : > { %v489_v17 = vpack.c.bf16 %v397_v10, %v393_v9  ;;  %2555 = vmatpush3.bf16.msra.mxu0 %v2806_v34  ;;  %v433_v10 = vld [vmem:[%s3129_s29 + $0x340] sm:$0xff] }
  0x87   : > { %v449_v34 = vld [vmem:[%s3129_s29 + $0x3c0] sm:$0xff] }
  0x8b   : > { %841 = vmatmul.mubr.bf16.gmra.mxu0 %v469_v18  ;;  %v491_v18 = vpack.c.bf16 %v399_v12, %v395_v11  ;;  %v437_v11 = vld [vmem:[%s3129_s29 + $0x360] sm:$0xff]  ;;  %v435_v12 = vld [vmem:[%s3129_s29 + $0x350] sm:$0xff] }
  0x8c   : > { %1002 = vmatmul.mubr.bf16.gmra.mxu1 %v471_v19  ;;  %848 = vmatprep.mubr.bf16.mxu0 %v474_v20  ;;  %v494_v19 = vpack.c.bf16 %v406_v14, %v402_v13  ;;  %v496_v20 = vpack.c.bf16 %v408_v16, %v404_v15  ;;  %v439_v13 = vld [vmem:[%s3129_s29 + $0x370] sm:$0xff]  ;;  %v442_v14 = vld [vmem:[%s3129_s29 + $0x388] sm:$0xff]  ;;  %v444_v16 = vld [vmem:[%s3129_s29 + $0x398] sm:$0xff] }
  0x8d   : > { %1009 = vmatprep.mubr.bf16.mxu1 %v476_v21  ;;  %v401_v21 = vld [vmem:[%s3129_s29 + $0x240] sm:$0xff]  ;;  %v446_v15 = vld [vmem:[%s3129_s29 + $0x3a8] sm:$0xff] }
  0x93   : > { %849 = vmatmul.mubr.bf16.gmra.mxu0 %v473_v30  ;;  %v493_v30 = vpack.c.bf16 %v405_v22, %v401_v21  ;;  %v441_v22 = vld [vmem:[%s3129_s29 + $0x380] sm:$0xff] }
  0x94   : > { %1010 = vmatmul.mubr.bf16.gmra.mxu1 %v475_v31  ;;  %856 = vmatprep.mubr.bf16.mxu0 %v478_v32  ;;  %v495_v31 = vpack.c.bf16 %v407_v25, %v403_v23  ;;  %v498_v32 = vpack.c.bf16 %v414_v27, %v410_v26  ;;  %v445_v23 = vld [vmem:[%s3129_s29 + $0x3a0] sm:$0xff]  ;;  %v447_v25 = vld [vmem:[%s3129_s29 + $0x3b0] sm:$0xff]  ;;  %v450_v26 = vld [vmem:[%s3129_s29 + $0x3c8] sm:$0xff] }
  0x95   : > { %1017 = vmatprep.mubr.bf16.mxu1 %v480_v33  ;;  %v500_v33 = vpack.c.bf16 %v416_v29, %v412_v28  ;;  %v454_v27 = vld [vmem:[%s3129_s29 + $0x3e8] sm:$0xff]  ;;  %v452_v28 = vld [vmem:[%s3129_s29 + $0x3d8] sm:$0xff] }
  0x96   : > { %v456_v29 = vld [vmem:[%s3129_s29 + $0x3f8] sm:$0xff] }
  0x9b   : > { %857 = vmatmul.mubr.bf16.gmra.mxu0 %v477_v42  ;;  %v424_v42 = vld [vmem:[%s3129_s29 + $0x2f8] sm:$0xff] }
  0x9c   : > { %1018 = vmatmul.mubr.bf16.gmra.mxu1 %v479_v43  ;;  %864 = vmatprep.mubr.bf16.mxu0 %v482_v44  ;;  %v497_v43 = vpack.c.bf16 %v413_v36, %v409_v35  ;;  %v2807_v44 = vld [vmem:[%s3667_s3 + $0x10] sm:$0xff]   ;;  %v504_v47 = vpack.c.bf16 %v424_v42, %v420_v41  ;;  %v453_v35 = vld [vmem:[%s3129_s29 + $0x3e0] sm:$0xff] }
  0x9d   : > { %1025 = vmatprep.mubr.bf16.mxu1 %v484_v45  ;;  %v499_v45 = vpack.c.bf16 %v415_v38, %v411_v37  ;;  %2556 = vmatprep.subr.bf16.mxu0 %v2807_v44  ;;  %v451_v36 = vld [vmem:[%s3129_s29 + $0x3d0] sm:$0xff]  ;;  %v517_v38 = vpack.c.bf16 %v453_v35, %v449_v34  ;;  %v3294_v42 = vld [vmem:[%s3666_s2] ss:$0 sm:$0xff] }
  0x9e   : > { %2557 = vmatpush3.bf16.msra.mxu0 %v2807_v44  ;;  %v455_v37 = vld [vmem:[%s3129_s29 + $0x3f0] sm:$0xff] }
  0x9f   : > { %2558 = vmatprep.subr.bf16.mxu0 %v2808_v48  ;;  %v519_v39 = vpack.c.bf16 %v455_v37, %v451_v36 }
  0xa2   : > { %2559 = vmatpush3.bf16.msra.mxu0 %v2808_v48 }
  0xa3   : > { %865 = vmatmul.mubr.bf16.gmra.mxu0 %v481_v57  ;;  %v501_v57 = vpack.c.bf16 %v421_v50, %v417_v49 }
  0xa4   : > { %1026 = vmatmul.mubr.bf16.gmra.mxu1 %v483_v58  ;;  %872 = vmatprep.mubr.bf16.mxu0 %v486_v59  ;;  %v2809_v58 = vld [vmem:[%s3667_s3] sm:$0xff]   ;;  %v503_v59 = vpack.c.bf16 %v423_v52, %v419_v51 }
  0xa5   : > { %1033 = vmatprep.mubr.bf16.mxu1 %v488_v60  ;;  %v506_v60 = vpack.c.bf16 %v430_v54, %v426_v53  ;;  %2560 = vmatprep.subr.bf16.mxu0 %v2809_v58 }
  0xa6   : > { %2561 = vmatpush3.bf16.msra.mxu0 %v2809_v58  ;;  %v1425_v58 = vld [vmem:[%s3669_s5 + $0x38] sm:$0xff] }
  0xa7   : > { %2594 = vmatprep.subr.mxu1 %v1425_v58 }
  0xa8   : > { %2595 = vmatpush3.msra.mxu1 %v1425_v58 }
  0xab   : > { %873 = vmatmul.mubr.bf16.gmra.mxu0 %v485_v5  ;;  %v440_v5 = vld [vmem:[%s3129_s29 + $0x378] sm:$0xff] }
  0xac   : > { %1034 = vmatmul.mubr.bf16.gmra.mxu1 %v487_v6  ;;  %880 = vmatprep.mubr.bf16.mxu0 %v490_v7  ;;  %v505_v6 = vpack.c.bf16 %v429_v63, %v425_v62  ;;  %v507_v7 = vpack.c.bf16 %v431_v1, %v427_v0  ;;  %v512_v9 = vpack.c.bf16 %v440_v5, %v436_v4  ;;  %v1423_v0 = vld [vmem:[%s3669_s5 + $0x28] sm:$0xff] }
  0xad   : > { %1041 = vmatprep.mubr.bf16.mxu1 %v492_v8  ;;  %v510_v8 = vpack.c.bf16 %v438_v3, %v434_v2 }
  0xb3   : > { %881 = vmatmul.mubr.bf16.gmra.mxu0 %v489_v17  ;;  %v448_v17 = vld [vmem:[%s3129_s29 + $0x3b8] sm:$0xff] }
  0xb4   : > { %1042 = vmatmul.mubr.bf16.gmra.mxu1 %v491_v18  ;;  %888 = vmatprep.mubr.bf16.mxu0 %v494_v19  ;;  %v509_v18 = vpack.c.bf16 %v437_v11, %v433_v10  ;;  %v511_v19 = vpack.c.bf16 %v439_v13, %v435_v12  ;;  %v516_v21 = vpack.c.bf16 %v448_v17, %v444_v16 }
  0xb5   : > { %1049 = vmatprep.mubr.bf16.mxu1 %v496_v20  ;;  %v514_v20 = vpack.c.bf16 %v446_v15, %v442_v14 }
  0xbb   : > { %889 = vmatmul.mubr.bf16.gmra.mxu0 %v493_v30  ;;  %v513_v30 = vpack.c.bf16 %v445_v23, %v441_v22 }
  0xbc   : > { %1050 = vmatmul.mubr.bf16.gmra.mxu1 %v495_v31  ;;  %896 = vmatprep.mubr.bf16.mxu0 %v498_v32  ;;  %v515_v31 = vpack.c.bf16 %v447_v25, %v443_v24  ;;  %v518_v32 = vpack.c.bf16 %v454_v27, %v450_v26 }
  0xbd   : > { %1057 = vmatprep.mubr.bf16.mxu1 %v500_v33  ;;  %v520_v33 = vpack.c.bf16 %v456_v29, %v452_v28 }
  0xc3   : > { %897 = vmatmul.mubr.bf16.gmra.mxu0 %v497_v43 }
  0xc4   : > { %1058 = vmatmul.mubr.bf16.gmra.mxu1 %v499_v45  ;;  %904 = vmatprep.mubr.bf16.mxu0 %v502_v46 }
  0xc5   : > { %1065 = vmatprep.mubr.bf16.mxu1 %v504_v47 }
  0xcb   : > { %905 = vmatmul.mubr.bf16.gmra.mxu0 %v501_v57 }
  0xcc   : > { %1066 = vmatmul.mubr.bf16.gmra.mxu1 %v503_v59  ;;  %912 = vmatprep.mubr.bf16.mxu0 %v506_v60  ;;  %v1424_v59 = vld [vmem:[%s3669_s5 + $0x30] sm:$0xff] }
  0xcd   : > { %1073 = vmatprep.mubr.bf16.mxu1 %v508_v61  ;;  %2596 = vmatprep.subr.mxu1 %v1424_v59 }
  0xce   : > { %2597 = vmatpush3.msra.mxu1 %v1424_v59 }
  0xcf   : > { %2598 = vmatprep.subr.mxu1 %v1423_v0 }
  0xd0   : > { %2599 = vmatpush3.msra.mxu1 %v1423_v0 }
  0xd3   : > { %913 = vmatmul.mubr.bf16.gmra.mxu0 %v505_v6  ;;  %v1422_v6 = vld [vmem:[%s3669_s5 + $0x20] sm:$0xff] }
  0xd4   : > { %1074 = vmatmul.mubr.bf16.gmra.mxu1 %v507_v7  ;;  %920 = vmatprep.mubr.bf16.mxu0 %v510_v8 }
  0xd5   : > { %1081 = vmatprep.mubr.bf16.mxu1 %v512_v9  ;;  %2600 = vmatprep.subr.mxu1 %v1422_v6 }
  0xd6   : > { %2601 = vmatpush3.msra.mxu1 %v1422_v6 }
  0xdb   : > { %921 = vmatmul.mubr.bf16.gmra.mxu0 %v509_v18 }
  0xdc   : > { %1082 = vmatmul.mubr.bf16.gmra.mxu1 %v511_v19  ;;  %928 = vmatprep.mubr.bf16.mxu0 %v514_v20 }
  0xdd   : > { %1089 = vmatprep.mubr.bf16.mxu1 %v516_v21 }
  0xe3   : > { %929 = vmatmul.mubr.bf16.gmra.mxu0 %v513_v30 }
  0xe4   : > { %1090 = vmatmul.mubr.bf16.gmra.mxu1 %v515_v31  ;;  %936 = vmatprep.mubr.bf16.mxu0 %v518_v32 }
  0xe5   : > { %1097 = vmatprep.mubr.bf16.mxu1 %v520_v33 }
  0xeb   : > { %937 = vmatmul.mubr.bf16.gmra.mxu0 %v517_v38 }
  0xec   : > { %1098 = vmatmul.mubr.bf16.gmra.mxu1 %v519_v39 }
 0x133   : > { %v2274_v40 = vpop.f32.mrf.mxu0 }
 0x134   : > { %v2386_v41 = vpop.f32.mrf.mxu1 }
 0x135   : > { %v2275_v43 = vpop.f32.mrf.mxu0 }
 0x136   : > { %v2276_v44 = vadd.f32 %v2275_v43, %v2274_v40  ;;  %v2387_v45 = vpop.f32.mrf.mxu1 }
 0x137   : > { %v2277_v46 = vpop.f32.mrf.mxu0  ;;  %v2388_v50 = vadd.f32 %v2387_v45, %v2386_v41 }
 0x138   : > { %v819_v47 = vadd.f32 %v2276_v44, %v3294_v42  ;;  %v2389_v48 = vpop.f32.mrf.mxu1 }
 0x139   : > { %v2278_v49 = vpop.f32.mrf.mxu0 }
 0x13a   : > { %v2279_v51 = vadd.f32 %v2278_v49, %v2277_v46  ;;  %v2390_v52 = vpop.f32.mrf.mxu1  ;;  %v980_v54 = vadd.f32 %v2388_v50, %v819_v47 }
 0x13b   : > { %v2280_v53 = vpop.f32.mrf.mxu0  ;;  %v2391_v56 = vadd.f32 %v2390_v52, %v2389_v48 }
 0x13c   : > { %v822_v55 = vadd.f32 %v2279_v51, %v3294_v42  ;;  %v2392_v57 = vpop.f32.mrf.mxu1  ;;  %v1106_v2 = vmax.f32 %v980_v54, 0.0 }
 0x13d   : > { %v2281_v60 = vpop.f32.mrf.mxu0 }
 0x13e   : > { %v983_v61 = vadd.f32 %v2391_v56, %v822_v55  ;;  %v2282_v62 = vadd.f32 %v2281_v60, %v2280_v53  ;;  %v2393_v63 = vpop.f32.mrf.mxu1 }
 0x13f   : > { %v2283_v1 = vpop.f32.mrf.mxu0  ;;  %v2394_v8 = vadd.f32 %v2393_v63, %v2392_v57 }
 0x140   : > { %v1107_v3 = vmax.f32 %v983_v61, 0.0  ;;  %v827_v4 = vadd.f32 %v2282_v62, %v3294_v42  ;;  %v2395_v5 = vpop.f32.mrf.mxu1 }
 0x141   : > { %v2284_v7 = vpop.f32.mrf.mxu0 }
 0x142   : > { %v2285_v9 = vadd.f32 %v2284_v7, %v2283_v1  ;;  %v2396_v10 = vpop.f32.mrf.mxu1  ;;  %v1138_v11 = vpack.c.bf16 %v1107_v3, %v1106_v2  ;;  %v988_v13 = vadd.f32 %v2394_v8, %v827_v4 }
 0x143   : > { %v2286_v12 = vpop.f32.mrf.mxu0  ;;  %v2397_v15 = vadd.f32 %v2396_v10, %v2395_v5 }
 0x144   : > { %v830_v14 = vadd.f32 %v2285_v9, %v3294_v42  ;;  %v2398_v16 = vpop.f32.mrf.mxu1  ;;  %2562 = vmatprep.mubr.bf16.mxu0 %v1138_v11  ;;  %v1108_v22 = vmax.f32 %v988_v13, 0.0 }
 0x145   : > { %v2287_v17 = vpop.f32.mrf.mxu0 }
 0x146   : > { %v991_v18 = vadd.f32 %v2397_v15, %v830_v14  ;;  %v2288_v19 = vadd.f32 %v2287_v17, %v2286_v12  ;;  %v2399_v20 = vpop.f32.mrf.mxu1 }
 0x147   : > { %v2289_v21 = vpop.f32.mrf.mxu0  ;;  %v2400_v28 = vadd.f32 %v2399_v20, %v2398_v16 }
 0x148   : > { %v1109_v23 = vmax.f32 %v991_v18, 0.0  ;;  %v835_v24 = vadd.f32 %v2288_v19, %v3294_v42  ;;  %v2401_v25 = vpop.f32.mrf.mxu1 }
 0x149   : > { %v2290_v26 = vpop.f32.mrf.mxu0 }
 0x14a   : > { %v1139_v27 = vpack.c.bf16 %v1109_v23, %v1108_v22  ;;  %v2291_v29 = vadd.f32 %v2290_v26, %v2289_v21  ;;  %v2402_v30 = vpop.f32.mrf.mxu1  ;;  %v996_v32 = vadd.f32 %v2400_v28, %v835_v24 }
 0x14b   : > { %v2292_v31 = vpop.f32.mrf.mxu0  ;;  %v2403_v34 = vadd.f32 %v2402_v30, %v2401_v25 }
 0x14c   : > { %v838_v33 = vadd.f32 %v2291_v29, %v3294_v42  ;;  %v2404_v35 = vpop.f32.mrf.mxu1  ;;  %2563 = vmatmul.mubr.bf16.vlgmr.msra.gmra.mxu0 %v1139_v27  ;;  %v1110_v41 = vmax.f32 %v996_v32, 0.0 }
 0x14d   : > { %v2293_v36 = vpop.f32.mrf.mxu0 }
 0x14e   : > { %v999_v37 = vadd.f32 %v2403_v34, %v838_v33  ;;  %v2294_v38 = vadd.f32 %v2293_v36, %v2292_v31  ;;  %v2405_v39 = vpop.f32.mrf.mxu1 }
 0x14f   : > { %v2295_v40 = vpop.f32.mrf.mxu0  ;;  %v2406_v47 = vadd.f32 %v2405_v39, %v2404_v35 }
 0x150   : > { %v1111_v43 = vmax.f32 %v999_v37, 0.0  ;;  %v843_v44 = vadd.f32 %v2294_v38, %v3294_v42  ;;  %v2407_v45 = vpop.f32.mrf.mxu1 }
 0x151   : > { %v2296_v46 = vpop.f32.mrf.mxu0 }
 0x152   : > { %v2297_v48 = vadd.f32 %v2296_v46, %v2295_v40  ;;  %v2408_v49 = vpop.f32.mrf.mxu1  ;;  %v1140_v50 = vpack.c.bf16 %v1111_v43, %v1110_v41  ;;  %v1004_v52 = vadd.f32 %v2406_v47, %v843_v44 }
 0x153   : > { %v2298_v51 = vpop.f32.mrf.mxu0  ;;  %v2409_v54 = vadd.f32 %v2408_v49, %v2407_v45 }
 0x154   : > { %v846_v53 = vadd.f32 %v2297_v48, %v3294_v42  ;;  %v2410_v55 = vpop.f32.mrf.mxu1  ;;  %2566 = vmatprep.mubr.bf16.mxu0 %v1140_v50  ;;  %v1112_v61 = vmax.f32 %v1004_v52, 0.0 }
 0x155   : > { %v2299_v56 = vpop.f32.mrf.mxu0 }
 0x156   : > { %v1007_v57 = vadd.f32 %v2409_v54, %v846_v53  ;;  %v2300_v58 = vadd.f32 %v2299_v56, %v2298_v51  ;;  %v2411_v59 = vpop.f32.mrf.mxu1 }
 0x157   : > { %v2301_v60 = vpop.f32.mrf.mxu0  ;;  %v2412_v2 = vadd.f32 %v2411_v59, %v2410_v55 }
 0x158   : > { %v1113_v62 = vmax.f32 %v1007_v57, 0.0  ;;  %v851_v63 = vadd.f32 %v2300_v58, %v3294_v42  ;;  %v2413_v0 = vpop.f32.mrf.mxu1 }
 0x159   : > { %v2302_v1 = vpop.f32.mrf.mxu0 }
 0x15a   : > { %v2303_v3 = vadd.f32 %v2302_v1, %v2301_v60  ;;  %v2414_v4 = vpop.f32.mrf.mxu1  ;;  %v1141_v5 = vpack.c.bf16 %v1113_v62, %v1112_v61  ;;  %v1012_v7 = vadd.f32 %v2412_v2, %v851_v63 }
 0x15b   : > { %v2304_v6 = vpop.f32.mrf.mxu0  ;;  %v2415_v9 = vadd.f32 %v2414_v4, %v2413_v0 }
 0x15c   : > { %v854_v8 = vadd.f32 %v2303_v3, %v3294_v42  ;;  %v2416_v10 = vpop.f32.mrf.mxu1  ;;  %2567 = vmatmul.mubr.bf16.gmra.mxu0 %v1141_v5  ;;  %v1114_v16 = vmax.f32 %v1012_v7, 0.0 }
 0x15d   : > { %v2305_v11 = vpop.f32.mrf.mxu0 }
 0x15e   : > { %v1015_v12 = vadd.f32 %v2415_v9, %v854_v8  ;;  %v2306_v13 = vadd.f32 %v2305_v11, %v2304_v6  ;;  %v2417_v14 = vpop.f32.mrf.mxu1 }
 0x15f   : > { %v2307_v15 = vpop.f32.mrf.mxu0  ;;  %v2418_v21 = vadd.f32 %v2417_v14, %v2416_v10 }
 0x160   : > { %v1115_v17 = vmax.f32 %v1015_v12, 0.0  ;;  %v859_v18 = vadd.f32 %v2306_v13, %v3294_v42  ;;  %v2419_v19 = vpop.f32.mrf.mxu1 }
 0x161   : > { %v2308_v20 = vpop.f32.mrf.mxu0 }
 0x162   : > { %v2309_v22 = vadd.f32 %v2308_v20, %v2307_v15  ;;  %v2420_v23 = vpop.f32.mrf.mxu1  ;;  %v1142_v24 = vpack.c.bf16 %v1115_v17, %v1114_v16  ;;  %v1020_v26 = vadd.f32 %v2418_v21, %v859_v18 }
 0x163   : > { %v2310_v25 = vpop.f32.mrf.mxu0  ;;  %v2421_v28 = vadd.f32 %v2420_v23, %v2419_v19 }
 0x164   : > { %v862_v27 = vadd.f32 %v2309_v22, %v3294_v42  ;;  %v2422_v29 = vpop.f32.mrf.mxu1  ;;  %2570 = vmatprep.mubr.bf16.mxu0 %v1142_v24  ;;  %v1116_v35 = vmax.f32 %v1020_v26, 0.0 }
 0x165   : > { %v2311_v30 = vpop.f32.mrf.mxu0 }
 0x166   : > { %v1023_v31 = vadd.f32 %v2421_v28, %v862_v27  ;;  %v2312_v32 = vadd.f32 %v2311_v30, %v2310_v25  ;;  %v2423_v33 = vpop.f32.mrf.mxu1 }
 0x167   : > { %v2313_v34 = vpop.f32.mrf.mxu0  ;;  %v2424_v40 = vadd.f32 %v2423_v33, %v2422_v29 }
 0x168   : > { %v1117_v36 = vmax.f32 %v1023_v31, 0.0  ;;  %v867_v37 = vadd.f32 %v2312_v32, %v3294_v42  ;;  %v2425_v38 = vpop.f32.mrf.mxu1 }
 0x169   : > { %v2314_v39 = vpop.f32.mrf.mxu0 }
 0x16a   : > { %v2315_v41 = vadd.f32 %v2314_v39, %v2313_v34  ;;  %v2426_v43 = vpop.f32.mrf.mxu1  ;;  %v1143_v44 = vpack.c.bf16 %v1117_v36, %v1116_v35  ;;  %v1028_v46 = vadd.f32 %v2424_v40, %v867_v37 }
 0x16b   : > { %v2316_v45 = vpop.f32.mrf.mxu0  ;;  %v2427_v48 = vadd.f32 %v2426_v43, %v2425_v38 }
 0x16c   : > { %v870_v47 = vadd.f32 %v2315_v41, %v3294_v42  ;;  %v2428_v49 = vpop.f32.mrf.mxu1  ;;  %2571 = vmatmul.mubr.bf16.gmra.mxu0 %v1143_v44  ;;  %v1118_v55 = vmax.f32 %v1028_v46, 0.0 }
 0x16d   : > { %v2317_v50 = vpop.f32.mrf.mxu0 }
 0x16e   : > { %v1031_v51 = vadd.f32 %v2427_v48, %v870_v47  ;;  %v2318_v52 = vadd.f32 %v2317_v50, %v2316_v45  ;;  %v2429_v53 = vpop.f32.mrf.mxu1 }
 0x16f   : > { %v2319_v54 = vpop.f32.mrf.mxu0  ;;  %v2430_v60 = vadd.f32 %v2429_v53, %v2428_v49 }
 0x170   : > { %v1119_v56 = vmax.f32 %v1031_v51, 0.0  ;;  %v875_v57 = vadd.f32 %v2318_v52, %v3294_v42  ;;  %v2431_v58 = vpop.f32.mrf.mxu1 }
 0x171   : > { %v2320_v59 = vpop.f32.mrf.mxu0 }
 0x172   : > { %v2321_v61 = vadd.f32 %v2320_v59, %v2319_v54  ;;  %v2432_v62 = vpop.f32.mrf.mxu1  ;;  %v1144_v63 = vpack.c.bf16 %v1119_v56, %v1118_v55  ;;  %v1036_v1 = vadd.f32 %v2430_v60, %v875_v57 }
 0x173   : > { %v2322_v0 = vpop.f32.mrf.mxu0  ;;  %v2433_v3 = vadd.f32 %v2432_v62, %v2431_v58 }
 0x174   : > { %v878_v2 = vadd.f32 %v2321_v61, %v3294_v42  ;;  %v2434_v4 = vpop.f32.mrf.mxu1  ;;  %2574 = vmatprep.mubr.bf16.mxu0 %v1144_v63  ;;  %v1120_v10 = vmax.f32 %v1036_v1, 0.0 }
 0x175   : > { %v2323_v5 = vpop.f32.mrf.mxu0 }
 0x176   : > { %v1039_v6 = vadd.f32 %v2433_v3, %v878_v2  ;;  %v2324_v7 = vadd.f32 %v2323_v5, %v2322_v0  ;;  %v2435_v8 = vpop.f32.mrf.mxu1 }
 0x177   : > { %v2325_v9 = vpop.f32.mrf.mxu0  ;;  %v2436_v15 = vadd.f32 %v2435_v8, %v2434_v4  ;;  %v1421_v4 = vld [vmem:[%s3669_s5 + $0x18] sm:$0xff] }
 0x178   : > { %v1121_v11 = vmax.f32 %v1039_v6, 0.0  ;;  %v883_v12 = vadd.f32 %v2324_v7, %v3294_v42  ;;  %v2437_v13 = vpop.f32.mrf.mxu1  ;;  %2602 = vmatprep.subr.mxu1 %v1421_v4 }
 0x179   : > { %v2326_v14 = vpop.f32.mrf.mxu0  ;;  %2603 = vmatpush3.msra.mxu1 %v1421_v4 }
 0x17a   : > { %v2327_v16 = vadd.f32 %v2326_v14, %v2325_v9  ;;  %v2438_v17 = vpop.f32.mrf.mxu1  ;;  %v1145_v18 = vpack.c.bf16 %v1121_v11, %v1120_v10  ;;  %v1044_v20 = vadd.f32 %v2436_v15, %v883_v12  ;;  %v1420_v10 = vld [vmem:[%s3669_s5 + $0x10] sm:$0xff] }
 0x17b   : > { %v2328_v19 = vpop.f32.mrf.mxu0  ;;  %v2439_v22 = vadd.f32 %v2438_v17, %v2437_v13  ;;  %2604 = vmatprep.subr.mxu1 %v1420_v10 }
 0x17c   : > { %v886_v21 = vadd.f32 %v2327_v16, %v3294_v42  ;;  %v2440_v23 = vpop.f32.mrf.mxu1  ;;  %2575 = vmatmul.mubr.bf16.gmra.mxu0 %v1145_v18  ;;  %v1122_v29 = vmax.f32 %v1044_v20, 0.0  ;;  %2605 = vmatpush3.msra.mxu1 %v1420_v10  ;;  %v1419_v16 = vld [vmem:[%s3669_s5 + $0x8] sm:$0xff] }
 0x17d   : > { %v2329_v24 = vpop.f32.mrf.mxu0  ;;  %2606 = vmatprep.subr.mxu1 %v1419_v16 }
 0x17e   : > { %v1047_v25 = vadd.f32 %v2439_v22, %v886_v21  ;;  %v2330_v26 = vadd.f32 %v2329_v24, %v2328_v19  ;;  %v2441_v27 = vpop.f32.mrf.mxu1  ;;  %2607 = vmatpush3.msra.mxu1 %v1419_v16  ;;  %v1418_v22 = vld [vmem:[%s3669_s5] sm:$0xff] }
 0x17f   : > { %v2331_v28 = vpop.f32.mrf.mxu0  ;;  %v2442_v34 = vadd.f32 %v2441_v27, %v2440_v23  ;;  %2608 = vmatprep.subr.mxu1 %v1418_v22 }
 0x180   : > { %v1123_v30 = vmax.f32 %v1047_v25, 0.0  ;;  %v891_v31 = vadd.f32 %v2330_v26, %v3294_v42  ;;  %v2443_v32 = vpop.f32.mrf.mxu1  ;;  %2609 = vmatpush3.msra.mxu1 %v1418_v22 }
 0x181   : > { %v2332_v33 = vpop.f32.mrf.mxu0 }
 0x182   : > { %v2333_v35 = vadd.f32 %v2332_v33, %v2331_v28  ;;  %v2444_v36 = vpop.f32.mrf.mxu1  ;;  %v1146_v37 = vpack.c.bf16 %v1123_v30, %v1122_v29  ;;  %v1052_v39 = vadd.f32 %v2442_v34, %v891_v31 }
 0x183   : > { %v2334_v38 = vpop.f32.mrf.mxu0  ;;  %v2445_v41 = vadd.f32 %v2444_v36, %v2443_v32 }
 0x184   : > { %v894_v40 = vadd.f32 %v2333_v35, %v3294_v42  ;;  %v2446_v43 = vpop.f32.mrf.mxu1  ;;  %2578 = vmatprep.mubr.bf16.mxu0 %v1146_v37  ;;  %v1124_v49 = vmax.f32 %v1052_v39, 0.0 }
 0x185   : > { %v2335_v44 = vpop.f32.mrf.mxu0 }
 0x186   : > { %v1055_v45 = vadd.f32 %v2445_v41, %v894_v40  ;;  %v2336_v46 = vadd.f32 %v2335_v44, %v2334_v38  ;;  %v2447_v47 = vpop.f32.mrf.mxu1 }
 0x187   : > { %v2337_v48 = vpop.f32.mrf.mxu0  ;;  %v2448_v54 = vadd.f32 %v2447_v47, %v2446_v43 }
 0x188   : > { %v1125_v50 = vmax.f32 %v1055_v45, 0.0  ;;  %v899_v51 = vadd.f32 %v2336_v46, %v3294_v42  ;;  %v2449_v52 = vpop.f32.mrf.mxu1 }
 0x189   : > { %v2338_v53 = vpop.f32.mrf.mxu0 }
 0x18a   : > { %v2339_v55 = vadd.f32 %v2338_v53, %v2337_v48  ;;  %v2450_v56 = vpop.f32.mrf.mxu1  ;;  %v1147_v57 = vpack.c.bf16 %v1125_v50, %v1124_v49  ;;  %v1060_v59 = vadd.f32 %v2448_v54, %v899_v51 }
 0x18b   : > { %v2340_v58 = vpop.f32.mrf.mxu0  ;;  %v2451_v61 = vadd.f32 %v2450_v56, %v2449_v52 }
 0x18c   : > { %v902_v60 = vadd.f32 %v2339_v55, %v3294_v42  ;;  %v2452_v62 = vpop.f32.mrf.mxu1  ;;  %2579 = vmatmul.mubr.bf16.gmra.mxu0 %v1147_v57  ;;  %v1126_v5 = vmax.f32 %v1060_v59, 0.0 }
 0x18d   : > { %v2341_v63 = vpop.f32.mrf.mxu0 }
 0x18e   : > { %v1063_v0 = vadd.f32 %v2451_v61, %v902_v60  ;;  %v2342_v1 = vadd.f32 %v2341_v63, %v2340_v58  ;;  %v2453_v2 = vpop.f32.mrf.mxu1 }
 0x18f   : > { %v2343_v3 = vpop.f32.mrf.mxu0  ;;  %v2454_v11 = vadd.f32 %v2453_v2, %v2452_v62 }
 0x190   : > { %v1127_v6 = vmax.f32 %v1063_v0, 0.0  ;;  %v907_v7 = vadd.f32 %v2342_v1, %v3294_v42  ;;  %v2455_v8 = vpop.f32.mrf.mxu1 }
 0x191   : > { %v2344_v9 = vpop.f32.mrf.mxu0 }
 0x192   : > { %v2345_v12 = vadd.f32 %v2344_v9, %v2343_v3  ;;  %v2456_v13 = vpop.f32.mrf.mxu1  ;;  %v1148_v14 = vpack.c.bf16 %v1127_v6, %v1126_v5  ;;  %v1068_v17 = vadd.f32 %v2454_v11, %v907_v7 }
 0x193   : > { %v2346_v15 = vpop.f32.mrf.mxu0  ;;  %v2457_v19 = vadd.f32 %v2456_v13, %v2455_v8 }
 0x194   : > { %v910_v18 = vadd.f32 %v2345_v12, %v3294_v42  ;;  %v2458_v20 = vpop.f32.mrf.mxu1  ;;  %2582 = vmatprep.mubr.bf16.mxu0 %v1148_v14  ;;  %v1128_v27 = vmax.f32 %v1068_v17, 0.0 }
 0x195   : > { %v2347_v21 = vpop.f32.mrf.mxu0 }
 0x196   : > { %v1071_v23 = vadd.f32 %v2457_v19, %v910_v18  ;;  %v2348_v24 = vadd.f32 %v2347_v21, %v2346_v15  ;;  %v2459_v25 = vpop.f32.mrf.mxu1 }
 0x197   : > { %v2349_v26 = vpop.f32.mrf.mxu0  ;;  %v2460_v32 = vadd.f32 %v2459_v25, %v2458_v20 }
 0x198   : > { %v1129_v28 = vmax.f32 %v1071_v23, 0.0  ;;  %v915_v29 = vadd.f32 %v2348_v24, %v3294_v42  ;;  %v2461_v30 = vpop.f32.mrf.mxu1 }
 0x199   : > { %v2350_v31 = vpop.f32.mrf.mxu0 }
 0x19a   : > { %v2351_v33 = vadd.f32 %v2350_v31, %v2349_v26  ;;  %v2462_v34 = vpop.f32.mrf.mxu1  ;;  %v1149_v35 = vpack.c.bf16 %v1129_v28, %v1128_v27  ;;  %v1076_v37 = vadd.f32 %v2460_v32, %v915_v29 }
 0x19b   : > { %v2352_v36 = vpop.f32.mrf.mxu0  ;;  %v2463_v39 = vadd.f32 %v2462_v34, %v2461_v30 }
 0x19c   : > { %v918_v38 = vadd.f32 %v2351_v33, %v3294_v42  ;;  %v2464_v40 = vpop.f32.mrf.mxu1  ;;  %2583 = vmatmul.mubr.bf16.gmra.mxu0 %v1149_v35  ;;  %v1130_v47 = vmax.f32 %v1076_v37, 0.0 }
 0x19d   : > { %v2353_v41 = vpop.f32.mrf.mxu0 }
 0x19e   : > { %v1079_v43 = vadd.f32 %v2463_v39, %v918_v38  ;;  %v2354_v44 = vadd.f32 %v2353_v41, %v2352_v36  ;;  %v2465_v45 = vpop.f32.mrf.mxu1  ;;  %v3355_v38 = vld [vmem:[%s3668_s4] ss:$0 sm:$0xff] }
 0x19f   : > { %v2355_v46 = vpop.f32.mrf.mxu0  ;;  %v2466_v52 = vadd.f32 %v2465_v45, %v2464_v40 }
 0x1a0   : > { %v1131_v48 = vmax.f32 %v1079_v43, 0.0  ;;  %v923_v49 = vadd.f32 %v2354_v44, %v3294_v42  ;;  %v2467_v50 = vpop.f32.mrf.mxu1 }
 0x1a1   : > { %v2356_v51 = vpop.f32.mrf.mxu0 }
 0x1a2   : > { %v2357_v53 = vadd.f32 %v2356_v51, %v2355_v46  ;;  %v2468_v54 = vpop.f32.mrf.mxu1  ;;  %v1150_v55 = vpack.c.bf16 %v1131_v48, %v1130_v47  ;;  %v1084_v57 = vadd.f32 %v2466_v52, %v923_v49 }
 0x1a3   : > { %v2358_v56 = vpop.f32.mrf.mxu0  ;;  %v2469_v59 = vadd.f32 %v2468_v54, %v2467_v50 }
 0x1a4   : > { %v926_v58 = vadd.f32 %v2357_v53, %v3294_v42  ;;  %v2470_v60 = vpop.f32.mrf.mxu1  ;;  %2586 = vmatprep.mubr.bf16.mxu0 %v1150_v55  ;;  %v1132_v2 = vmax.f32 %v1084_v57, 0.0 }
 0x1a5   : > { %v2359_v61 = vpop.f32.mrf.mxu0 }
 0x1a6   : > { %v1087_v62 = vadd.f32 %v2469_v59, %v926_v58  ;;  %v2360_v63 = vadd.f32 %v2359_v61, %v2358_v56  ;;  %v2471_v0 = vpop.f32.mrf.mxu1 }
 0x1a7   : > { %v2361_v1 = vpop.f32.mrf.mxu0  ;;  %v2472_v7 = vadd.f32 %v2471_v0, %v2470_v60 }
 0x1a8   : > { %v1133_v3 = vmax.f32 %v1087_v62, 0.0  ;;  %v931_v4 = vadd.f32 %v2360_v63, %v3294_v42  ;;  %v2473_v5 = vpop.f32.mrf.mxu1 }
 0x1a9   : > { %v2362_v6 = vpop.f32.mrf.mxu0 }
 0x1aa   : > { %v2363_v8 = vadd.f32 %v2362_v6, %v2361_v1  ;;  %v2474_v9 = vpop.f32.mrf.mxu1  ;;  %v1151_v10 = vpack.c.bf16 %v1133_v3, %v1132_v2  ;;  %v1092_v12 = vadd.f32 %v2472_v7, %v931_v4 }
 0x1ab   : > { %v2364_v11 = vpop.f32.mrf.mxu0  ;;  %v2475_v14 = vadd.f32 %v2474_v9, %v2473_v5 }
 0x1ac   : > { %v934_v13 = vadd.f32 %v2363_v8, %v3294_v42  ;;  %v2476_v15 = vpop.f32.mrf.mxu1  ;;  %2587 = vmatmul.mubr.bf16.gmra.mxu0 %v1151_v10  ;;  %v1134_v21 = vmax.f32 %v1092_v12, 0.0 }
 0x1ad   : > { %v2365_v16 = vpop.f32.mrf.mxu0 }
 0x1ae   : > { %v1095_v17 = vadd.f32 %v2475_v14, %v934_v13  ;;  %v2366_v18 = vadd.f32 %v2365_v16, %v2364_v11  ;;  %v2477_v19 = vpop.f32.mrf.mxu1 }
 0x1af   : > { %v2367_v20 = vpop.f32.mrf.mxu0  ;;  %v2478_v26 = vadd.f32 %v2477_v19, %v2476_v15 }
 0x1b0   : > { %v1135_v22 = vmax.f32 %v1095_v17, 0.0  ;;  %v939_v23 = vadd.f32 %v2366_v18, %v3294_v42  ;;  %v2479_v24 = vpop.f32.mrf.mxu1 }
 0x1b1   : > { %v2368_v25 = vpop.f32.mrf.mxu0 }
 0x1b2   : > { %v2369_v27 = vadd.f32 %v2368_v25, %v2367_v20  ;;  %v2480_v28 = vpop.f32.mrf.mxu1  ;;  %v1152_v29 = vpack.c.bf16 %v1135_v22, %v1134_v21  ;;  %v1100_v30 = vadd.f32 %v2478_v26, %v939_v23 }
 0x1b3   : > { %v2481_v32 = vadd.f32 %v2480_v28, %v2479_v24 }
 0x1b4   : > { %v942_v31 = vadd.f32 %v2369_v27, %v3294_v42  ;;  %2590 = vmatprep.mubr.bf16.mxu0 %v1152_v29  ;;  %v1136_v34 = vmax.f32 %v1100_v30, 0.0 }
 0x1b6   : > { %v1103_v33 = vadd.f32 %v2481_v32, %v942_v31 }
 0x1b8   : > { %v1137_v35 = vmax.f32 %v1103_v33, 0.0 }
 0x1ba   : > { %v1153_v36 = vpack.c.bf16 %v1137_v35, %v1136_v34 }
 0x1bc   : > { %2591 = vmatmul.mubr.bf16.gmra.mxu0 %v1153_v36 }
 0x20c   : > { %v2564_v37 = vpop.f32.mrf.mxu0 }
 0x20d   : > { %v1268_v42 = vadd.f32 %v2564_v37, %v3355_v38 }
 0x20e   : > { %v1259_v39 = vpop.f32.mrf.mxu0 }
 0x20f   : > { %v1260_v40 = vadd.f32 %v3355_v38, %v1259_v39  ;;  %v1388_v48 = vmax.f32 %v1268_v42, 0.0 }
 0x210   : > { %v2565_v41 = vpop.f32.mrf.mxu0 }
 0x211   : > { %v1386_v43 = vmax.f32 %v1260_v40, 0.0  ;;  %v1271_v46 = vadd.f32 %v2565_v41, %v3355_v38 }
 0x212   : > { %v1262_v44 = vpop.f32.mrf.mxu0 }
 0x213   : > { %v1263_v45 = vadd.f32 %v3355_v38, %v1262_v44  ;;  %2610 = vmatprep.mubr.msk.f32.mxu1 %vm1428_vm0, %v1386_v43  ;;  %v1389_v49 = vmax.f32 %v1271_v46, 0.0 }
 0x215   : > { %v1387_v47 = vmax.f32 %v1263_v45, 0.0 }
 0x217   : > { %2611 = vmatmul.mubr.msk.f32.vlgmr.msra.gmra.mxu1 %vm1428_vm0, %v1387_v47 }
 0x218   : > { %2613 = vmatprep.mubr.msk.f32.mxu1 %vm1428_vm0, %v1388_v48 }
 0x21b   : > { %2614 = vmatmul.mubr.msk.f32.gmra.mxu1 %vm1428_vm0, %v1389_v49 }
 0x21c   : > { %v2568_v50 = vpop.f32.mrf.mxu0 }
 0x21d   : > { %v1284_v55 = vadd.f32 %v2568_v50, %v3355_v38 }
 0x21e   : > { %v1275_v51 = vpop.f32.mrf.mxu0 }
 0x21f   : > { %v1276_v52 = vadd.f32 %v3355_v38, %v1275_v51  ;;  %v1392_v60 = vmax.f32 %v1284_v55, 0.0 }
 0x220   : > { %v2569_v53 = vpop.f32.mrf.mxu0 }
 0x221   : > { %v1390_v54 = vmax.f32 %v1276_v52, 0.0  ;;  %v1287_v58 = vadd.f32 %v2569_v53, %v3355_v38 }
 0x222   : > { %v1278_v56 = vpop.f32.mrf.mxu0 }
 0x223   : > { %v1279_v57 = vadd.f32 %v3355_v38, %v1278_v56  ;;  %2616 = vmatprep.mubr.msk.f32.mxu1 %vm1428_vm0, %v1390_v54  ;;  %v1393_v61 = vmax.f32 %v1287_v58, 0.0 }
 0x225   : > { %v1391_v59 = vmax.f32 %v1279_v57, 0.0 }
 0x227   : > { %2617 = vmatmul.mubr.msk.f32.gmra.mxu1 %vm1428_vm0, %v1391_v59 }
 0x228   : > { %2619 = vmatprep.mubr.msk.f32.mxu1 %vm1428_vm0, %v1392_v60 }
 0x22b   : > { %2620 = vmatmul.mubr.msk.f32.gmra.mxu1 %vm1428_vm0, %v1393_v61 }
 0x22c   : > { %v2572_v62 = vpop.f32.mrf.mxu0 }
 0x22d   : > { %v1300_v3 = vadd.f32 %v2572_v62, %v3355_v38 }
 0x22e   : > { %v1291_v63 = vpop.f32.mrf.mxu0 }
 0x22f   : > { %v1292_v0 = vadd.f32 %v3355_v38, %v1291_v63  ;;  %v1396_v8 = vmax.f32 %v1300_v3, 0.0 }
 0x230   : > { %v2573_v1 = vpop.f32.mrf.mxu0 }
 0x231   : > { %v1394_v2 = vmax.f32 %v1292_v0, 0.0  ;;  %v1303_v6 = vadd.f32 %v2573_v1, %v3355_v38 }
 0x232   : > { %v1294_v4 = vpop.f32.mrf.mxu0 }
 0x233   : > { %v1295_v5 = vadd.f32 %v3355_v38, %v1294_v4  ;;  %2622 = vmatprep.mubr.msk.f32.mxu1 %vm1428_vm0, %v1394_v2  ;;  %v1397_v9 = vmax.f32 %v1303_v6, 0.0 }
 0x235   : > { %v1395_v7 = vmax.f32 %v1295_v5, 0.0 }
 0x237   : > { %2623 = vmatmul.mubr.msk.f32.gmra.mxu1 %vm1428_vm0, %v1395_v7  ;;  %v3422_v7 = vstv %s1426_s26 }
 0x238   : > { %2625 = vmatprep.mubr.msk.f32.mxu1 %vm1428_vm0, %v1396_v8 }
 0x23b   : > { %2626 = vmatmul.mubr.msk.f32.gmra.mxu1 %vm1428_vm0, %v1397_v9 }
 0x23c   : > { %v2576_v10 = vpop.f32.mrf.mxu0 }
 0x23d   : > { %v1316_v15 = vadd.f32 %v2576_v10, %v3355_v38 }
 0x23e   : > { %v1307_v11 = vpop.f32.mrf.mxu0 }
 0x23f   : > { %v1308_v12 = vadd.f32 %v3355_v38, %v1307_v11  ;;  %v1400_v20 = vmax.f32 %v1316_v15, 0.0 }
 0x240   : > { %v2577_v13 = vpop.f32.mrf.mxu0 }
 0x241   : > { %v1398_v14 = vmax.f32 %v1308_v12, 0.0  ;;  %v1319_v18 = vadd.f32 %v2577_v13, %v3355_v38 }
 0x242   : > { %v1310_v16 = vpop.f32.mrf.mxu0 }
 0x243   : > { %v1311_v17 = vadd.f32 %v3355_v38, %v1310_v16  ;;  %2628 = vmatprep.mubr.msk.f32.mxu1 %vm1428_vm0, %v1398_v14  ;;  %v1401_v21 = vmax.f32 %v1319_v18, 0.0 }
 0x245   : > { %v1399_v19 = vmax.f32 %v1311_v17, 0.0 }
 0x247   : > { %2629 = vmatmul.mubr.msk.f32.gmra.mxu1 %vm1428_vm0, %v1399_v19 }
 0x248   : > { %2631 = vmatprep.mubr.msk.f32.mxu1 %vm1428_vm0, %v1400_v20 }
 0x24b   : > { %2632 = vmatmul.mubr.msk.f32.gmra.mxu1 %vm1428_vm0, %v1401_v21 }
 0x24c   : > { %v2580_v22 = vpop.f32.mrf.mxu0 }
 0x24d   : > { %v1332_v27 = vadd.f32 %v2580_v22, %v3355_v38 }
 0x24e   : > { %v1323_v23 = vpop.f32.mrf.mxu0 }
 0x24f   : > { %v1324_v24 = vadd.f32 %v3355_v38, %v1323_v23  ;;  %v1404_v32 = vmax.f32 %v1332_v27, 0.0 }
 0x250   : > { %v2581_v25 = vpop.f32.mrf.mxu0 }
 0x251   : > { %v1402_v26 = vmax.f32 %v1324_v24, 0.0  ;;  %v1335_v30 = vadd.f32 %v2581_v25, %v3355_v38 }
 0x252   : > { %v1326_v28 = vpop.f32.mrf.mxu0 }
 0x253   : > { %v1327_v29 = vadd.f32 %v3355_v38, %v1326_v28  ;;  %2634 = vmatprep.mubr.msk.f32.mxu1 %vm1428_vm0, %v1402_v26  ;;  %v1405_v33 = vmax.f32 %v1335_v30, 0.0 }
 0x255   : > { %v1403_v31 = vmax.f32 %v1327_v29, 0.0 }
 0x257   : > { %2635 = vmatmul.mubr.msk.f32.gmra.mxu1 %vm1428_vm0, %v1403_v31 }
 0x258   : > { %2637 = vmatprep.mubr.msk.f32.mxu1 %vm1428_vm0, %v1404_v32 }
 0x25b   : > { %2638 = vmatmul.mubr.msk.f32.gmra.mxu1 %vm1428_vm0, %v1405_v33 }
 0x25c   : > { %v2584_v34 = vpop.f32.mrf.mxu0 }
 0x25d   : > { %v1348_v40 = vadd.f32 %v2584_v34, %v3355_v38 }
 0x25e   : > { %v1339_v35 = vpop.f32.mrf.mxu0 }
 0x25f   : > { %v1340_v36 = vadd.f32 %v3355_v38, %v1339_v35  ;;  %v1408_v45 = vmax.f32 %v1348_v40, 0.0 }
 0x260   : > { %v2585_v37 = vpop.f32.mrf.mxu0 }
 0x261   : > { %v1406_v39 = vmax.f32 %v1340_v36, 0.0  ;;  %v1351_v42 = vadd.f32 %v2585_v37, %v3355_v38 }
 0x262   : > { %v1342_v41 = vpop.f32.mrf.mxu0 }
 0x263   : > { %v1343_v43 = vadd.f32 %v3355_v38, %v1342_v41  ;;  %2640 = vmatprep.mubr.msk.f32.mxu1 %vm1428_vm0, %v1406_v39  ;;  %v1409_v46 = vmax.f32 %v1351_v42, 0.0 }
 0x265   : > { %v1407_v44 = vmax.f32 %v1343_v43, 0.0 }
 0x267   : > { %2641 = vmatmul.mubr.msk.f32.gmra.mxu1 %vm1428_vm0, %v1407_v44 }
 0x268   : > { %2643 = vmatprep.mubr.msk.f32.mxu1 %vm1428_vm0, %v1408_v45 }
 0x26b   : > { %2644 = vmatmul.mubr.msk.f32.gmra.mxu1 %vm1428_vm0, %v1409_v46 }
 0x26c   : > { %v2588_v47 = vpop.f32.mrf.mxu0 }
 0x26d   : > { %v1364_v52 = vadd.f32 %v2588_v47, %v3355_v38 }
 0x26e   : > { %v1355_v48 = vpop.f32.mrf.mxu0 }
 0x26f   : > { %v1356_v49 = vadd.f32 %v3355_v38, %v1355_v48  ;;  %v1412_v57 = vmax.f32 %v1364_v52, 0.0 }
 0x270   : > { %v2589_v50 = vpop.f32.mrf.mxu0 }
 0x271   : > { %v1410_v51 = vmax.f32 %v1356_v49, 0.0  ;;  %v1367_v55 = vadd.f32 %v2589_v50, %v3355_v38 }
 0x272   : > { %v1358_v53 = vpop.f32.mrf.mxu0 }
 0x273   : > { %v1359_v54 = vadd.f32 %v3355_v38, %v1358_v53  ;;  %2646 = vmatprep.mubr.msk.f32.mxu1 %vm1428_vm0, %v1410_v51  ;;  %v1413_v58 = vmax.f32 %v1367_v55, 0.0 }
 0x275   : > { %v1411_v56 = vmax.f32 %v1359_v54, 0.0 }
 0x277   : > { %2647 = vmatmul.mubr.msk.f32.gmra.mxu1 %vm1428_vm0, %v1411_v56 }
 0x278   : > { %2649 = vmatprep.mubr.msk.f32.mxu1 %vm1428_vm0, %v1412_v57 }
 0x27b   : > { %2650 = vmatmul.mubr.msk.f32.gmra.mxu1 %vm1428_vm0, %v1413_v58 }
 0x27c   : > { %v2592_v59 = vpop.f32.mrf.mxu0 }
 0x27d   : > { %v1380_v0 = vadd.f32 %v2592_v59, %v3355_v38 }
 0x27e   : > { %v1371_v60 = vpop.f32.mrf.mxu0 }
 0x27f   : > { %v1372_v61 = vadd.f32 %v3355_v38, %v1371_v60  ;;  %v1416_v5 = vmax.f32 %v1380_v0, 0.0 }
 0x280   : > { %v2593_v62 = vpop.f32.mrf.mxu0 }
 0x281   : > { %v1414_v63 = vmax.f32 %v1372_v61, 0.0  ;;  %v1383_v3 = vadd.f32 %v2593_v62, %v3355_v38 }
 0x282   : > { %v1374_v1 = vpop.f32.mrf.mxu0 }
 0x283   : > { %v1375_v2 = vadd.f32 %v3355_v38, %v1374_v1  ;;  %2652 = vmatprep.mubr.msk.f32.mxu1 %vm1428_vm0, %v1414_v63  ;;  %v1417_v6 = vmax.f32 %v1383_v3, 0.0 }
 0x285   : > { %v1415_v4 = vmax.f32 %v1375_v2, 0.0 }
 0x287   : > { %2653 = vmatmul.mubr.msk.f32.gmra.mxu1 %vm1428_vm0, %v1415_v4 }
 0x288   : > { %2655 = vmatprep.mubr.msk.f32.mxu1 %vm1428_vm0, %v1416_v5 }
 0x28b   : > { %2656 = vmatmul.mubr.msk.f32.gmra.mxu1 %vm1428_vm0, %v1417_v6 }
 0x2d7   : > { %v2612_v8 = vpop.f32.mrf.mxu1 }
 0x2d8   : > { %v1597_v9 = vadd.f32 %v2612_v8, %v3422_v7 }
 0x2d9   : > { %v1591_v10 = vpop.f32.mrf.mxu1 }
 0x2da   : > { %1752 = vst.msk [vmem:[%s3425_s18 + $0x8] sm:$0xff] %vm1750_vm1, %v1597_v9  ;;  %v1592_v38 = vadd.f32 %v1591_v10, %v3422_v7 }
 0x2db   : > { %v2615_v11 = vpop.f32.mrf.mxu1 }
 0x2dc   : > { %1751 = vst.msk [vmem:[%s3425_s18] sm:$0xff] %vm1750_vm1, %v1592_v38  ;;  %v1607_v12 = vadd.f32 %v2615_v11, %v3422_v7 }
 0x2dd   : > { %v1601_v13 = vpop.f32.mrf.mxu1 }
 0x2de   : > { %1754 = vst.msk [vmem:[%s3425_s18 + $0x18] sm:$0xff] %vm1750_vm1, %v1607_v12  ;;  %v1602_v14 = vadd.f32 %v1601_v13, %v3422_v7 }
 0x2e0   : > { %1753 = vst.msk [vmem:[%s3425_s18 + $0x10] sm:$0xff] %vm1750_vm1, %v1602_v14 }
 0x2e7   : > { %v2618_v15 = vpop.f32.mrf.mxu1 }
 0x2e8   : > { %v1617_v16 = vadd.f32 %v2618_v15, %v3422_v7 }
 0x2e9   : > { %v1611_v17 = vpop.f32.mrf.mxu1 }
 0x2ea   : > { %1756 = vst.msk [vmem:[%s3425_s18 + $0x28] sm:$0xff] %vm1750_vm1, %v1617_v16  ;;  %v1612_v18 = vadd.f32 %v1611_v17, %v3422_v7 }
 0x2eb   : > { %v2621_v19 = vpop.f32.mrf.mxu1 }
 0x2ec   : > { %1755 = vst.msk [vmem:[%s3425_s18 + $0x20] sm:$0xff] %vm1750_vm1, %v1612_v18  ;;  %v1627_v20 = vadd.f32 %v2621_v19, %v3422_v7 }
 0x2ed   : > { %v1621_v21 = vpop.f32.mrf.mxu1 }
 0x2ee   : > { %1758 = vst.msk [vmem:[%s3425_s18 + $0x38] sm:$0xff] %vm1750_vm1, %v1627_v20  ;;  %v1622_v22 = vadd.f32 %v1621_v21, %v3422_v7 }
 0x2f0   : > { %1757 = vst.msk [vmem:[%s3425_s18 + $0x30] sm:$0xff] %vm1750_vm1, %v1622_v22 }
 0x2f7   : > { %v2624_v23 = vpop.f32.mrf.mxu1 }
 0x2f8   : > { %v1637_v24 = vadd.f32 %v2624_v23, %v3422_v7 }
 0x2f9   : > { %v1631_v25 = vpop.f32.mrf.mxu1 }
 0x2fa   : > { %1760 = vst.msk [vmem:[%s3425_s18 + $0x48] sm:$0xff] %vm1750_vm1, %v1637_v24  ;;  %v1632_v26 = vadd.f32 %v1631_v25, %v3422_v7 }
 0x2fb   : > { %v2627_v27 = vpop.f32.mrf.mxu1 }
 0x2fc   : > { %1759 = vst.msk [vmem:[%s3425_s18 + $0x40] sm:$0xff] %vm1750_vm1, %v1632_v26  ;;  %v1647_v28 = vadd.f32 %v2627_v27, %v3422_v7 }
 0x2fd   : > { %v1641_v29 = vpop.f32.mrf.mxu1 }
 0x2fe   : > { %1762 = vst.msk [vmem:[%s3425_s18 + $0x58] sm:$0xff] %vm1750_vm1, %v1647_v28  ;;  %v1642_v30 = vadd.f32 %v1641_v29, %v3422_v7 }
 0x300   : > { %1761 = vst.msk [vmem:[%s3425_s18 + $0x50] sm:$0xff] %vm1750_vm1, %v1642_v30 }
 0x307   : > { %v2630_v31 = vpop.f32.mrf.mxu1 }
 0x308   : > { %v1657_v32 = vadd.f32 %v2630_v31, %v3422_v7 }
 0x309   : > { %v1651_v33 = vpop.f32.mrf.mxu1 }
 0x30a   : > { %1764 = vst.msk [vmem:[%s3425_s18 + $0x68] sm:$0xff] %vm1750_vm1, %v1657_v32  ;;  %v1652_v34 = vadd.f32 %v1651_v33, %v3422_v7 }
 0x30b   : > { %v2633_v35 = vpop.f32.mrf.mxu1 }
 0x30c   : > { %1763 = vst.msk [vmem:[%s3425_s18 + $0x60] sm:$0xff] %vm1750_vm1, %v1652_v34  ;;  %v1667_v36 = vadd.f32 %v2633_v35, %v3422_v7 }
 0x30d   : > { %v1661_v37 = vpop.f32.mrf.mxu1 }
 0x30e   : > { %1766 = vst.msk [vmem:[%s3425_s18 + $0x78] sm:$0xff] %vm1750_vm1, %v1667_v36  ;;  %v1662_v39 = vadd.f32 %v1661_v37, %v3422_v7 }
 0x310   : > { %1765 = vst.msk [vmem:[%s3425_s18 + $0x70] sm:$0xff] %vm1750_vm1, %v1662_v39 }
 0x317   : > { %v2636_v40 = vpop.f32.mrf.mxu1 }
 0x318   : > { %v1677_v41 = vadd.f32 %v2636_v40, %v3422_v7 }
 0x319   : > { %v1671_v43 = vpop.f32.mrf.mxu1 }
 0x31a   : > { %1768 = vst.msk [vmem:[%s3425_s18 + $0x88] sm:$0xff] %vm1750_vm1, %v1677_v41  ;;  %v1672_v42 = vadd.f32 %v1671_v43, %v3422_v7 }
 0x31b   : > { %v2639_v44 = vpop.f32.mrf.mxu1 }
 0x31c   : > { %1767 = vst.msk [vmem:[%s3425_s18 + $0x80] sm:$0xff] %vm1750_vm1, %v1672_v42  ;;  %v1687_v45 = vadd.f32 %v2639_v44, %v3422_v7 }
 0x31d   : > { %v1681_v46 = vpop.f32.mrf.mxu1 }
 0x31e   : > { %1770 = vst.msk [vmem:[%s3425_s18 + $0x98] sm:$0xff] %vm1750_vm1, %v1687_v45  ;;  %v1682_v47 = vadd.f32 %v1681_v46, %v3422_v7 }
 0x320   : > { %1769 = vst.msk [vmem:[%s3425_s18 + $0x90] sm:$0xff] %vm1750_vm1, %v1682_v47 }
 0x327   : > { %v2642_v48 = vpop.f32.mrf.mxu1 }
 0x328   : > { %v1697_v49 = vadd.f32 %v2642_v48, %v3422_v7 }
 0x329   : > { %v1691_v50 = vpop.f32.mrf.mxu1 }
 0x32a   : > { %1772 = vst.msk [vmem:[%s3425_s18 + $0xa8] sm:$0xff] %vm1750_vm1, %v1697_v49  ;;  %v1692_v51 = vadd.f32 %v1691_v50, %v3422_v7 }
 0x32b   : > { %v2645_v52 = vpop.f32.mrf.mxu1 }
 0x32c   : > { %1771 = vst.msk [vmem:[%s3425_s18 + $0xa0] sm:$0xff] %vm1750_vm1, %v1692_v51  ;;  %v1707_v53 = vadd.f32 %v2645_v52, %v3422_v7 }
 0x32d   : > { %v1701_v54 = vpop.f32.mrf.mxu1 }
 0x32e   : > { %1774 = vst.msk [vmem:[%s3425_s18 + $0xb8] sm:$0xff] %vm1750_vm1, %v1707_v53  ;;  %v1702_v55 = vadd.f32 %v1701_v54, %v3422_v7 }
 0x330   : > { %1773 = vst.msk [vmem:[%s3425_s18 + $0xb0] sm:$0xff] %vm1750_vm1, %v1702_v55 }
 0x337   : > { %v2648_v56 = vpop.f32.mrf.mxu1 }
 0x338   : > { %v1717_v57 = vadd.f32 %v2648_v56, %v3422_v7 }
 0x339   : > { %v1711_v58 = vpop.f32.mrf.mxu1 }
 0x33a   : > { %1776 = vst.msk [vmem:[%s3425_s18 + $0xc8] sm:$0xff] %vm1750_vm1, %v1717_v57  ;;  %v1712_v59 = vadd.f32 %v1711_v58, %v3422_v7 }
 0x33b   : > { %v2651_v60 = vpop.f32.mrf.mxu1 }
 0x33c   : > { %1775 = vst.msk [vmem:[%s3425_s18 + $0xc0] sm:$0xff] %vm1750_vm1, %v1712_v59  ;;  %v1727_v61 = vadd.f32 %v2651_v60, %v3422_v7 }
 0x33d   : > { %v1721_v62 = vpop.f32.mrf.mxu1 }
 0x33e   : > { %1778 = vst.msk [vmem:[%s3425_s18 + $0xd8] sm:$0xff] %vm1750_vm1, %v1727_v61  ;;  %v1722_v63 = vadd.f32 %v1721_v62, %v3422_v7 }
 0x340   : > { %1777 = vst.msk [vmem:[%s3425_s18 + $0xd0] sm:$0xff] %vm1750_vm1, %v1722_v63 }
 0x347   : > { %v2654_v0 = vpop.f32.mrf.mxu1 }
 0x348   : > { %v1737_v1 = vadd.f32 %v2654_v0, %v3422_v7 }
 0x349   : > { %v1731_v2 = vpop.f32.mrf.mxu1 }
 0x34a   : > { %1780 = vst.msk [vmem:[%s3425_s18 + $0xe8] sm:$0xff] %vm1750_vm1, %v1737_v1  ;;  %v1732_v3 = vadd.f32 %v1731_v2, %v3422_v7 }
 0x34b   : > { %v2657_v4 = vpop.f32.mrf.mxu1 }
 0x34c   : > { %1779 = vst.msk [vmem:[%s3425_s18 + $0xe0] sm:$0xff] %vm1750_vm1, %v1732_v3  ;;  %v1747_v5 = vadd.f32 %v2657_v4, %v3422_v7  ;;  %1789 = sbr.rel (!%p3678_p5) target bundleno = 897 (0x381), region = 60 }
 0x34d   : > { %v1741_v6 = vpop.f32.mrf.mxu1 }
 0x34e   : > { %1782 = vst.msk [vmem:[%s3425_s18 + $0xf8] sm:$0xff] %vm1750_vm1, %v1747_v5  ;;  %v1742_v8 = vadd.f32 %v1741_v6, %v3422_v7 }
 0x350   : > { %1781 = vst.msk [vmem:[%s3425_s18 + $0xf0] sm:$0xff] %vm1750_vm1, %v1742_v8 }
 0x351   : > { %s3691_s23 = smov (!%p1792_p11, %s1791_s23), 32 }
 0x352   : > { %s2237_s15 = sshll.u32 %s3691_s23, 7 }
 0x353   : > { %p2240_p4 = scmp.eq.s32.totalorder %s2237_s15, 0 }
 0x354   : > { %s3535_s13 = sshrl.u32 (!%p2240_p4), %s3691_s23, 5 }
 0x355   : > { %1800 = sbr.rel (%p2240_p4) target bundleno = 897 (0x381), region = 64  ;;  %p2241_p2 = scmp.le.s32.totalorder (!%p2240_p4), %s3535_s13, 0 }
 0x35a   : > { %2088 = sbr.rel (%p2241_p2) target bundleno = 880 (0x370), region = 146  ;;  %s3679_s6 = smov (!%p2241_p2), %s3529_s8 }
 0x35b   : > { %s3680_s11 = smov (!%p2241_p2), %s3425_s18  ;;  %s3544_s16 = smov (!%p2241_p2), 0  }
 0x35c   : > { %s3546_s17 = smov (!%p2241_p2), 0  }
 0x35f LB: >> { %v1925_v7 = vld [vmem:[%s2940_s11] sm:$0xff]  ;;  %v1927_v9 = vld [vmem:[%s2940_s11 + $0x8] sm:$0xff]  ;;  %v1929_v10 = vld [vmem:[%s2940_s11 + $0x10] sm:$0xff]  ;;  %s1989_s21 = sadd.s32 1, %s2944_s16  ;;  %s1919_s17 = sadd.s32 1, %s2948_s17   ;;  %s2948_s17 = sphi %s3546_s17, %s1919_s17   ;;  %s2944_s16 = sphi %s3544_s16, %s3683_s16   ;;  %s2940_s11 = sphi %s3680_s11, %s3682_s11   ;;  %s2936_s6 = sphi %s3679_s6, %s3681_s6  }
 0x360   : >> { %1926 = vst [vmem:[%s2936_s6] sm:$0xff] %v1925_v7  ;;  %1928 = vst [vmem:[%s2936_s6 + $0x8] sm:$0xff] %v1927_v9  ;;  %v1931_v38 = vld [vmem:[%s2940_s11 + $0x18] sm:$0xff]  ;;  %v1933_v11 = vld [vmem:[%s2940_s11 + $0x20] sm:$0xff]  ;;  %p1990_p3 = scmp.ge.s32.totalorder %s1989_s21, %s3535_s13  ;;  %p1918_p1 = scmp.ge.s32.totalorder %s1919_s17, %s3535_s13 }
 0x361   : >> { %1930 = vst [vmem:[%s2936_s6 + $0x10] sm:$0xff] %v1929_v10  ;;  %v1935_v12 = vld [vmem:[%s2940_s11 + $0x28] sm:$0xff]  ;;  %1932 = vst [vmem:[%s2936_s6 + $0x18] sm:$0xff] %v1931_v38  ;;  %v1937_v13 = vld [vmem:[%s2940_s11 + $0x30] sm:$0xff] }
 0x362   : >> { %1934 = vst [vmem:[%s2936_s6 + $0x20] sm:$0xff] %v1933_v11  ;;  %1936 = vst [vmem:[%s2936_s6 + $0x28] sm:$0xff] %v1935_v12  ;;  %v1939_v14 = vld [vmem:[%s2940_s11 + $0x38] sm:$0xff]  ;;  %v1941_v15 = vld [vmem:[%s2940_s11 + $0x40] sm:$0xff]  ;;  %s3693_s21 = smov (%p1990_p3, %s1989_s21), 0 }
 0x363   : >> { %1938 = vst [vmem:[%s2936_s6 + $0x30] sm:$0xff] %v1937_v13  ;;  %1940 = vst [vmem:[%s2936_s6 + $0x38] sm:$0xff] %v1939_v14  ;;  %v1943_v16 = vld [vmem:[%s2940_s11 + $0x48] sm:$0xff]  ;;  %v1945_v17 = vld [vmem:[%s2940_s11 + $0x50] sm:$0xff]  ;;  %s2242_s22 = sshll.u32 %s3693_s21, 8  ;;  %s3683_s16 = smov %s3693_s21 }
 0x364   : >> { %1942 = vst [vmem:[%s2936_s6 + $0x40] sm:$0xff] %v1941_v15  ;;  %v1947_v18 = vld [vmem:[%s2940_s11 + $0x58] sm:$0xff]  ;;  %1944 = vst [vmem:[%s2936_s6 + $0x48] sm:$0xff] %v1943_v16  ;;  %v1949_v19 = vld [vmem:[%s2940_s11 + $0x60] sm:$0xff]  ;;  %s3602_s12 = scalar_lea.vmem %s3425_s18, %s2242_s22 [#allocation7]   ;;  %s1995_s14 = scalar_lea.vmem %s3529_s8, %s2242_s22  }
 0x365   : >> { %1946 = vst [vmem:[%s2936_s6 + $0x50] sm:$0xff] %v1945_v17  ;;  %1948 = vst [vmem:[%s2936_s6 + $0x58] sm:$0xff] %v1947_v18  ;;  %v1951_v20 = vld [vmem:[%s2940_s11 + $0x68] sm:$0xff]  ;;  %v1953_v21 = vld [vmem:[%s2940_s11 + $0x70] sm:$0xff] }
 0x366   : >> { %1950 = vst [vmem:[%s2936_s6 + $0x60] sm:$0xff] %v1949_v19  ;;  %1952 = vst [vmem:[%s2936_s6 + $0x68] sm:$0xff] %v1951_v20  ;;  %v1955_v22 = vld [vmem:[%s2940_s11 + $0x78] sm:$0xff]  ;;  %v1957_v23 = vld [vmem:[%s2940_s11 + $0x80] sm:$0xff] }
 0x367   : >> { %1954 = vst [vmem:[%s2936_s6 + $0x70] sm:$0xff] %v1953_v21  ;;  %v1959_v24 = vld [vmem:[%s2940_s11 + $0x88] sm:$0xff]  ;;  %1956 = vst [vmem:[%s2936_s6 + $0x78] sm:$0xff] %v1955_v22  ;;  %v1961_v25 = vld [vmem:[%s2940_s11 + $0x90] sm:$0xff] }
 0x368   : >> { %1958 = vst [vmem:[%s2936_s6 + $0x80] sm:$0xff] %v1957_v23  ;;  %1960 = vst [vmem:[%s2936_s6 + $0x88] sm:$0xff] %v1959_v24  ;;  %v1963_v26 = vld [vmem:[%s2940_s11 + $0x98] sm:$0xff]  ;;  %v1965_v27 = vld [vmem:[%s2940_s11 + $0xa0] sm:$0xff] }
 0x369   : >> { %1962 = vst [vmem:[%s2936_s6 + $0x90] sm:$0xff] %v1961_v25  ;;  %1964 = vst [vmem:[%s2936_s6 + $0x98] sm:$0xff] %v1963_v26  ;;  %v1967_v28 = vld [vmem:[%s2940_s11 + $0xa8] sm:$0xff]  ;;  %v1969_v29 = vld [vmem:[%s2940_s11 + $0xb0] sm:$0xff] }
 0x36a   : >> { %1966 = vst [vmem:[%s2936_s6 + $0xa0] sm:$0xff] %v1965_v27  ;;  %v1971_v30 = vld [vmem:[%s2940_s11 + $0xb8] sm:$0xff]  ;;  %1968 = vst [vmem:[%s2936_s6 + $0xa8] sm:$0xff] %v1967_v28  ;;  %v1973_v31 = vld [vmem:[%s2940_s11 + $0xc0] sm:$0xff] }
 0x36b   : >> { %1970 = vst [vmem:[%s2936_s6 + $0xb0] sm:$0xff] %v1969_v29  ;;  %1972 = vst [vmem:[%s2936_s6 + $0xb8] sm:$0xff] %v1971_v30  ;;  %v1975_v32 = vld [vmem:[%s2940_s11 + $0xc8] sm:$0xff]  ;;  %v1977_v33 = vld [vmem:[%s2940_s11 + $0xd0] sm:$0xff]  ;;  %1921 = sbr.rel (!%p1918_p1) target bundleno = 863 (0x35f), region = 152 }
 0x36c   : >> { %1974 = vst [vmem:[%s2936_s6 + $0xc0] sm:$0xff] %v1973_v31  ;;  %1976 = vst [vmem:[%s2936_s6 + $0xc8] sm:$0xff] %v1975_v32  ;;  %v1979_v34 = vld [vmem:[%s2940_s11 + $0xd8] sm:$0xff]  ;;  %v1981_v35 = vld [vmem:[%s2940_s11 + $0xe0] sm:$0xff] }
 0x36d   : >> { %1978 = vst [vmem:[%s2936_s6 + $0xd0] sm:$0xff] %v1977_v33  ;;  %v1983_v36 = vld [vmem:[%s2940_s11 + $0xe8] sm:$0xff]  ;;  %1980 = vst [vmem:[%s2936_s6 + $0xd8] sm:$0xff] %v1979_v34  ;;  %v1985_v37 = vld [vmem:[%s2940_s11 + $0xf0] sm:$0xff] }
 0x36e   : >> { %1982 = vst [vmem:[%s2936_s6 + $0xe0] sm:$0xff] %v1981_v35  ;;  %1984 = vst [vmem:[%s2936_s6 + $0xe8] sm:$0xff] %v1983_v36  ;;  %v1987_v39 = vld [vmem:[%s2940_s11 + $0xf8] sm:$0xff]  ;;  %s3682_s11 = smov %s3602_s12 }
 0x36f   : >> { %1986 = vst [vmem:[%s2936_s6 + $0xf0] sm:$0xff] %v1985_v37  ;;  %1988 = vst [vmem:[%s2936_s6 + $0xf8] sm:$0xff] %v1987_v39  ;;  %s3681_s6 = smov %s1995_s14 }
 0x370 PF: > { %s3643_s29 = sand.u32 31, %s3691_s23   ;;  %s2256_s26 = sshll.u32 %s3535_s13, 8 }
 0x371   : > { %s2000_s9 = scalar_lea.vmem %s3425_s18, %s2256_s26 [#allocation7]   ;;  %s2002_s20 = scalar_lea.vmem %s3529_s8, %s2256_s26  }
 0x372   : > { %p2247_p6 = scmp.le.s32.totalorder %s3643_s29, 0 }
 0x373   : > { %s2950_s19 = smov (!%p2247_p6), %s2002_s20   ;;  %s2954_s24 = smov (!%p2247_p6), %s2000_s9  }
 0x374   : > { %2102 = sbr.rel (%p2247_p6) target bundleno = 897 (0x381), region = 157  ;;  %s2958_s25 = smov (!%p2247_p6), 0  }
 0x375   : > { %s2962_s15 = smov (!%p2247_p6), 0  }
 0x379 LB: >> { %v2012_v40 = vld [vmem:[%s2956_s24] sm:$0xff]  ;;  %s2014_s23 = sadd.s32 1, %s2960_s25  ;;  %s2006_s15 = sadd.s32 1, %s2964_s15   ;;  %s2964_s15 = sphi %s2962_s15, %s2006_s15   ;;  %s2960_s25 = sphi %s2958_s25, %s2959_s25   ;;  %s2956_s24 = sphi %s2954_s24, %s2019_s24   ;;  %s2952_s19 = sphi %s2950_s19, %s2020_s19  }
 0x37a   : >> { %2013 = vst [vmem:[%s2952_s19] sm:$0xff] %v2012_v40  ;;  %p2015_p7 = scmp.ge.s32.totalorder %s2014_s23, %s3643_s29  ;;  %p2005_p9 = scmp.ge.s32.totalorder %s2006_s15, %s3643_s29 }
 0x37c   : >> { %s3695_s23 = smov (%p2015_p7, %s2014_s23), 0  ;;  %2008 = sbr.rel (!%p2005_p9) target bundleno = 889 (0x379), region = 163 }
 0x37d   : >> { %s2248_s18 = sshll.u32 %s3695_s23, 3  ;;  %s2959_s25 = smov %s3695_s23  }
 0x37e   : >> { %s2019_s24 = scalar_lea.vmem %s2000_s9, %s2248_s18 [#allocation7]   ;;  %s2020_s19 = scalar_lea.vmem %s2002_s20, %s2248_s18  }
 0x381 PF: > { %p19_p8 = scmp.ge.s32.totalorder %s3037_s30, 4   ;;  %s3684_s26 = smov %s2924_s27 }
 0x382   : > { %s3685_s27 = smov %s2928_s28  ;;  %s3686_s28 = smov %s3047_s10 }
 0x383   : > { %s3687_s29 = smov %s3037_s30  ;;  %21 = sbr.rel (!%p19_p8) target bundleno = 6 (0x6), region = 174 }
 0x388   :  { %2036 = vsyncpa [#allocation4], 1 }
 0x389   :  { %2038 = vsyncpa [#allocation4 + $0x1], 1 }
 0x38a   :  { %2039 = vsyncpa [#allocation6], 1 }

</bundles_post_ra>
